<compile_context>
chip_gen: v6e
topology: v6e:2x2x1
jax: 0.10.0
libtpu: 0.0.40
codegen_flags: <defaults>
</compile_context>

<pallas_src>
import functools

import jax
import jax.numpy as jnp
from jax.experimental import pallas as pl
from jax.experimental.pallas import tpu as pltpu


def _stack_rows(arrays):
    """Stack 2-D arrays (same #cols) along rows, padding each section to a multiple of
    8 rows so every in-kernel slice starts on a sublane-tile boundary.
    Returns (slab, per-section starting-row offsets)."""
    parts, offs, row = [], [], 0
    for a in arrays:
        offs.append(row)
        pad = (-a.shape[0]) % 8
        if pad:
            a = jnp.concatenate([a, jnp.zeros((pad, a.shape[1]), a.dtype)], axis=0)
        parts.append(a)
        row += a.shape[0]
    return jnp.concatenate(parts, axis=0), tuple(offs)


# -----------------------------------------------------------------------------
# Fused forward kernel.  One grid step == TB batch elements, channel-major:
# rows = channels, lanes = TB*N batch-packed nodes (lane-dense everywhere).
# refs = [packed_in, (supports), w_enc, w_dec, (w_skip), node_const, w_linear, out]
# -----------------------------------------------------------------------------
def _gcr_ae_kernel(*refs, K, d_emb, lag, g1, g2, skip_rate, use_skip,
                   use_activation, node_offs, w_offs, mm_dtype):
    n_prop = K - 1
    it = iter(refs)
    packed_ref = next(it)
    s_ref = next(it) if n_prop > 0 else None
    w_enc_ref = next(it)
    w_dec_ref = next(it)
    w_skip_ref = next(it) if use_skip else None
    nc_ref = next(it)
    wlin_ref = next(it)
    out_ref = next(it)

    f32 = jnp.float32
    packed = packed_ref[...].astype(f32)            # (lag+g1+g2, M), M = TB*N lanes
    h1 = packed[lag:lag + g1, :]
    h2 = packed[lag + g1:, :]

    supports = [s_ref[k] for k in range(n_prop)] if n_prop > 0 else []

    (off_e, off_bg_e, off_bu_e, off_bg_d, off_bu_d,
     off_bg_s, off_bu_s, off_blin) = node_offs
    eT = nc_ref[off_e:off_e + d_emb, :]             # (D, M), lane-tiled node embedding

    def propagate(feat):
        # Channel-major graph conv: [feat, feat @ S1^T, ..., feat @ S_{K-1}^T].
        # Lane-dense (C, M)@(M, M) matmuls; the identity support stays implicit.
        outs = [feat]
        if supports:
            fc = feat.astype(mm_dtype)
            for s_t in supports:
                outs.append(jnp.dot(fc, s_t, preferred_element_type=f32))
        return outs

    def adaptive(feats, w, o):
        # Per-node adaptive weights WITHOUT materializing the (D*K*C, M) replicated
        # feature tensor: one MXU matmul to (D*o, M), then an unrolled e-weighted sum
        # over the embedding axis using aligned sublane row blocks.
        t = jnp.dot(w, feats.astype(mm_dtype), preferred_element_type=f32)
        acc = t[:o, :] * eT[0:1, :]
        for d in range(1, d_emb):
            acc = acc + t[d * o:(d + 1) * o, :] * eT[d:d + 1, :]
        return acc

    def gcrc(in_list, h, h_list, w_ref, offs, bg, bu, c_out, gate_feats=None):
        # AGCRN-style adaptive graph-conv GRU cell (channel-major).
        wg = w_ref[offs[0]:offs[0] + d_emb * 2 * c_out, :]
        wu = w_ref[offs[1]:offs[1] + d_emb * c_out, :]
        if gate_feats is None:
            gate_feats = jnp.concatenate(
                [jnp.concatenate([in_list[k], h_list[k]], axis=0) for k in range(K)],
                axis=0)
        zr = jax.nn.sigmoid(adaptive(gate_feats, wg, 2 * c_out) + bg)
        z = zr[:c_out, :]
        r = zr[c_out:, :]
        rh_list = propagate(r * h)
        c_feats = jnp.concatenate(
            [jnp.concatenate([in_list[k], rh_list[k]], axis=0) for k in range(K)],
            axis=0)
        hc = jnp.tanh(adaptive(c_feats, wu, c_out) + bu)
        return z * h + (1.0 - z) * hc

    # Shared graph propagation of [x; h1; h2]: one matmul per support, reused by the
    # encoder, decoder and skip-decoder.
    packed_list = propagate(packed)
    x_list = [p[:lag, :] for p in packed_list]
    h1_list = [p[lag:lag + g1, :] for p in packed_list]
    h2_list = [p[lag + g1:, :] for p in packed_list]

    # Encoder: its gate features [x_k ; h1_k] are contiguous row-slabs of packed_list.
    enc_gate = jnp.concatenate([p[:lag + g1, :] for p in packed_list], axis=0)
    h1n = gcrc(x_list, h1, h1_list, w_enc_ref, w_offs[0],
               nc_ref[off_bg_e:off_bg_e + 2 * g1, :],
               nc_ref[off_bu_e:off_bu_e + g1, :],
               g1, gate_feats=enc_gate)

    # Decoder (consumes the fresh h1).
    h1n_list = propagate(h1n)
    h21 = gcrc(h1n_list, h2, h2_list, w_dec_ref, w_offs[1],
               nc_ref[off_bg_d:off_bg_d + 2 * g2, :],
               nc_ref[off_bu_d:off_bu_d + g2, :], g2)

    if use_skip:
        h22 = gcrc(x_list, h2, h2_list, w_skip_ref, w_offs[2],
                   nc_ref[off_bg_s:off_bg_s + 2 * g2, :],
                   nc_ref[off_bu_s:off_bu_s + g2, :], g2)
        h2n = (1.0 - skip_rate) * h21 + skip_rate * h22
    else:
        h2n = h21

    # Output head: Linear(gru2_outlen -> lag); bias rows are pre-tiled across lanes.
    xn = (jnp.dot(wlin_ref[...], h2n.astype(mm_dtype), preferred_element_type=f32)
          + nc_ref[off_blin:off_blin + lag, :])
    if use_activation:
        xn = jnp.tanh(xn)

    # Direct row-block stores into the output slab: unmasked, full-lane vst.
    out_ref[:g1, :] = h1n.astype(out_ref.dtype)
    out_ref[g1:g1 + g2, :] = h2n.astype(out_ref.dtype)
    out_ref[g1 + g2:, :] = xn.astype(out_ref.dtype)


class GCRCParams:
    """Weight pools of one adaptive graph-conv GRU cell (AGCRN-style), pre-arranged for
    the channel-major kernel: the per-node adaptive matmul becomes t = W_dt @ feats
    followed by an e-weighted sum over the embedding axis (no D-fold replication)."""

    def __init__(self, key, in_channels, out_channels, K, embedding_dimensions):
        self.c_in = in_channels
        self.c_out = out_channels
        self.c_tot = in_channels + out_channels
        self.K = K
        self.d = embedding_dimensions
        k0, k1, k2, k3 = jax.random.split(key, 4)
        scale = 0.1
        # Weight pools: (D, K, C_in + C_out, O)
        self.pool_g = scale * jax.random.normal(
            k0, (self.d, K, self.c_tot, 2 * out_channels), jnp.float32)
        self.pool_u = scale * jax.random.normal(
            k1, (self.d, K, self.c_tot, out_channels), jnp.float32)
        self.bg_pool = scale * jax.random.normal(
            k2, (self.d, 2 * out_channels), jnp.float32)
        self.bu_pool = scale * jax.random.normal(
            k3, (self.d, out_channels), jnp.float32)

    def _flatten(self, pool, o):
        # (D, K, C_tot, O) -> (D*O, K*C_tot); row = (d, o), column = (k, c).
        # Column ordering matches the kernel's [in_k ; h_k] feature-row stacking.
        return (pool.reshape(self.d, self.K * self.c_tot, o)
                    .transpose(0, 2, 1).reshape(self.d * o, self.K * self.c_tot))

    def weight_slab(self, dtype):
        wg = self._flatten(self.pool_g, 2 * self.c_out).astype(dtype)
        wu = self._flatten(self.pool_u, self.c_out).astype(dtype)
        return _stack_rows([wg, wu])

    def biases(self, e):
        # Channel-major per-node biases: (O, N).
        return jnp.dot(e, self.bg_pool).T, jnp.dot(e, self.bu_pool).T


class GCR_AE:
    def __init__(self, key, *, number_of_nodes, lag, gru1_outlen, gru2_outlen, K,
                 GCN_embedding_dimensions, skip=True, skip_rate=0.3,
                 AE_if_activation=True, matmul_dtype=jnp.bfloat16):
        self.n = number_of_nodes
        self.lag = lag
        self.g1 = gru1_outlen
        self.g2 = gru2_outlen
        self.K = K
        self.d = GCN_embedding_dimensions
        self.skip = skip
        self.skip_rate = float(skip_rate)
        self.AE_if_activation = AE_if_activation
        self.mm_dtype = matmul_dtype
        k_e, k1, k2, k3, kw, kb = jax.random.split(key, 6)
        self.e = jax.random.normal(
            k_e, (number_of_nodes, GCN_embedding_dimensions), jnp.float32)
        self.enc = GCRCParams(k1, lag, gru1_outlen, K, GCN_embedding_dimensions)
        self.dec = GCRCParams(k2, gru1_outlen, gru2_outlen, K, GCN_embedding_dimensions)
        self.dec_skip = GCRCParams(k3, lag, gru2_outlen, K, GCN_embedding_dimensions)
        # nn.Linear(gru2_outlen, lag)
        self.W = 0.1 * jax.random.normal(kw, (lag, gru2_outlen), jnp.float32)
        self.b = 0.1 * jax.random.normal(kb, (lag,), jnp.float32)

    # -- constants derived only from the node embedding (hoisted out of the kernel) --
    def _cheb(self):
        e = self.e
        A = jax.nn.softmax(jnp.maximum(jnp.dot(e, e.T), 0.0), axis=1)
        cheb = [jnp.eye(self.n, dtype=jnp.float32), A]
        for _ in range(2, self.K):
            cheb.append(2.0 * jnp.dot(A, cheb[-1]) - cheb[-2])
        return cheb[1:self.K]          # non-identity supports, each (N, N)

    @staticmethod
    def _choose_tb(B, N, lane_target=128):
        # Smallest batch-pack factor TB dividing B whose lane width TB*N is a multiple
        # of the 128-lane vreg width; fall back to the whole batch (single block).
        for tb in range(1, B):
            if B % tb == 0 and (tb * N) % lane_target == 0:
                return tb
        return B

    def __call__(self, x, h1, h2):
        # x: (B, lag, N); h1: (B, g1, N); h2: (B, g2, N)  — already channel-major.
        B = x.shape[0]
        N, lag, g1, g2, D, K = self.n, self.lag, self.g1, self.g2, self.d, self.K
        mm = self.mm_dtype

        TB = self._choose_tb(B, N)
        M = TB * N                       # lane width of one grid step
        grid_steps = B // TB
        c_all = g1 + g2 + lag

        # Batch packed onto lanes: (B, C, N) -> (C, B*N).  This single permute replaces
        # the previous six (B,C,N)<->(B,N,C) transposes.
        packed_in = jnp.transpose(
            jnp.concatenate([x, h1, h2], axis=1), (1, 0, 2)).reshape(lag + g1 + g2, B * N)

        # Block-diagonal transposed supports: kron(I_TB, S^T) propagates TB batches in
        # one lane-dense matmul.  Stored in the matmul dtype (halves VMEM footprint).
        supports = None
        if K > 1:
            ident = jnp.eye(TB, dtype=jnp.float32)
            supports = jnp.stack(
                [jnp.kron(ident, c.T) for c in self._cheb()], axis=0).astype(mm)

        # Per-node constant slab: e^T, all biases, lane-tiled output bias (f32).
        e = self.e
        bg_e, bu_e = self.enc.biases(e)
        bg_d, bu_d = self.dec.biases(e)
        bg_s, bu_s = self.dec_skip.biases(e)
        blin = jnp.broadcast_to(self.b[:, None], (lag, N))
        node_slab, node_offs = _stack_rows(
            [e.T, bg_e, bu_e, bg_d, bu_d, bg_s, bu_s, blin])
        node_slab = jnp.tile(node_slab, (1, TB))             # width M, same per step

        # Per-cell weight slabs (matmul dtype).
        w_enc, enc_offs = self.enc.weight_slab(mm)
        w_dec, dec_offs = self.dec.weight_slab(mm)
        if self.skip:
            w_skip, skip_offs = self.dec_skip.weight_slab(mm)
        else:
            w_skip, skip_offs = None, (0, 0)
        wlin = self.W.astype(mm)                             # (lag, g2)

        kern = functools.partial(
            _gcr_ae_kernel, K=K, d_emb=D, lag=lag, g1=g1, g2=g2,
            skip_rate=self.skip_rate, use_skip=self.skip,
            use_activation=self.AE_if_activation,
            node_offs=node_offs, w_offs=(enc_offs, dec_offs, skip_offs),
            mm_dtype=mm)

        def lane_spec(rows):
            return pl.BlockSpec((rows, M), lambda g: (0, g))

        def const_spec(a):
            nd = a.ndim
            return pl.BlockSpec(tuple(a.shape), lambda g, _nd=nd: (0,) * _nd)

        operands = [packed_in]
        in_specs = [lane_spec(lag + g1 + g2)]
        if K > 1:
            operands.append(supports)
            in_specs.append(const_spec(supports))
        operands += [w_enc, w_dec]
        in_specs += [const_spec(w_enc), const_spec(w_dec)]
        if self.skip:
            operands.append(w_skip)
            in_specs.append(const_spec(w_skip))
        operands += [node_slab, wlin]
        in_specs += [const_spec(node_slab), const_spec(wlin)]

        out = pl.pallas_call(
            kern,
            out_shape=jax.ShapeDtypeStruct((c_all, B * N), jnp.float32),
            grid=(grid_steps,),
            in_specs=in_specs,
            out_specs=pl.BlockSpec((c_all, M), lambda g: (0, g)),
            compiler_params=pltpu.CompilerParams(
                dimension_semantics=("parallel",),
                vmem_limit_bytes=32 * 1024 * 1024),
        )(*operands)

        slab = jnp.transpose(out.reshape(c_all, B, N), (1, 0, 2))   # (B, c_all, N)
        h1_new = slab[:, :g1, :]
        h2_new = slab[:, g1:g1 + g2, :]
        x_new = slab[:, g1 + g2:, :]
        return x_new, h1_new, h2_new


def _reference_forward(model, x, h1, h2):
    """Pure-JAX float32 reference of the same forward (node-major), used to validate the
    bf16-MXU kernel with a relaxed tolerance (review correctness note #3)."""
    e = model.e
    A = jax.nn.softmax(jnp.maximum(jnp.dot(e, e.T), 0.0), axis=1)
    cheb = [jnp.eye(model.n, dtype=jnp.float32), A]
    for _ in range(2, model.K):
        cheb.append(2.0 * jnp.dot(A, cheb[-1]) - cheb[-2])
    sup = jnp.stack(cheb[:model.K], axis=0)                  # (K, N, N), incl. identity

    def cell(p, xin, h):                                     # xin/h: (B, N, C)
        def gconv(feat, pool, bpool):
            fk = jnp.einsum('knm,bmc->bknc', sup, feat)
            w = jnp.einsum('nd,dkco->nkco', e, pool)
            return jnp.einsum('bknc,nkco->bno', fk, w) + jnp.dot(e, bpool)[None]
        zr = jax.nn.sigmoid(gconv(jnp.concatenate([xin, h], -1), p.pool_g, p.bg_pool))
        z, r = zr[..., :p.c_out], zr[..., p.c_out:]
        hc = jnp.tanh(gconv(jnp.concatenate([xin, r * h], -1), p.pool_u, p.bu_pool))
        return z * h + (1.0 - z) * hc

    t = lambda a: jnp.transpose(a, (0, 2, 1))
    h1n = cell(model.enc, t(x), t(h1))
    h21 = cell(model.dec, h1n, t(h2))
    if model.skip:
        h22 = cell(model.dec_skip, t(x), t(h2))
        h2n = (1.0 - model.skip_rate) * h21 + model.skip_rate * h22
    else:
        h2n = h21
    xn = jnp.dot(h2n, model.W.T) + model.b
    if model.AE_if_activation:
        xn = jnp.tanh(xn)
    return t(xn), t(h1n), t(h2n)


if __name__ == "__main__":
    key = jax.random.PRNGKey(0)
    kp, kx, kh1, kh2 = jax.random.split(key, 4)

    # B=16, N=16 -> TB=8 batch elements packed per grid step (128 lanes), 2 "parallel"
    # grid steps (keeps both v7x TensorCores busy).
    B, N, LAG, G1, G2, K, D = 16, 16, 4, 8, 8, 2, 4
    model = GCR_AE(kp, number_of_nodes=N, lag=LAG, gru1_outlen=G1, gru2_outlen=G2,
                   K=K, GCN_embedding_dimensions=D, skip=True, skip_rate=0.3,
                   AE_if_activation=True)

    x = jax.random.normal(kx, (B, LAG, N), jnp.float32)
    h1 = 0.1 * jax.random.normal(kh1, (B, G1, N), jnp.float32)
    h2 = 0.1 * jax.random.normal(kh2, (B, G2, N), jnp.float32)

    x_new, h1_new, h2_new = model(x, h1, h2)
    jax.block_until_ready((x_new, h1_new, h2_new))

    assert x_new.shape == (B, LAG, N)
    assert h1_new.shape == (B, G1, N)
    assert h2_new.shape == (B, G2, N)
    assert jnp.all(jnp.isfinite(x_new))
    assert jnp.all(jnp.isfinite(h1_new))
    assert jnp.all(jnp.isfinite(h2_new))

    # Validate the bf16-MXU kernel against the f32 reference with a relaxed tolerance.
    x_r, h1_r, h2_r = _reference_forward(model, x, h1, h2)
    for got, want in ((x_new, x_r), (h1_new, h1_r), (h2_new, h2_r)):
        assert float(jnp.max(jnp.abs(got - want))) < 5e-2

    print("KERNEL_OK")
</pallas_src>

<mosaic_0001>
module attributes {stable_mosaic.version = 11 : i64} {
  func.func @_gcr_ae_kernel(%arg0: i32, %arg1: memref<20x128xf32, #tpu.memory_space<vmem>>, %arg2: memref<1x128x128xbf16, #tpu.memory_space<vmem>>, %arg3: memref<96x24xbf16, #tpu.memory_space<vmem>>, %arg4: memref<96x32xbf16, #tpu.memory_space<vmem>>, %arg5: memref<96x24xbf16, #tpu.memory_space<vmem>>, %arg6: memref<88x128xf32, #tpu.memory_space<vmem>>, %arg7: memref<4x8xbf16, #tpu.memory_space<vmem>>, %arg8: memref<20x128xf32, #tpu.memory_space<vmem>>) attributes {dimension_semantics = [#tpu.dimension_semantics<parallel>], iteration_bounds = array<i64: 2>, scalar_prefetch = 0 : i64, scratch_operands = 0 : i64, tpu.core_type = #tpu.core_type<tc>, window_params = [{transform_indices = @transform_0, window_bounds = array<i64: 20, 128>}, {pipeline_mode = #tpu.pipeline_mode<synchronous>, transform_indices = @transform_1, window_bounds = array<i64: 1, 128, 128>}, {pipeline_mode = #tpu.pipeline_mode<synchronous>, transform_indices = @transform_2, window_bounds = array<i64: 96, 24>}, {pipeline_mode = #tpu.pipeline_mode<synchronous>, transform_indices = @transform_3, window_bounds = array<i64: 96, 32>}, {pipeline_mode = #tpu.pipeline_mode<synchronous>, transform_indices = @transform_4, window_bounds = array<i64: 96, 24>}, {pipeline_mode = #tpu.pipeline_mode<synchronous>, transform_indices = @transform_5, window_bounds = array<i64: 88, 128>}, {pipeline_mode = #tpu.pipeline_mode<synchronous>, transform_indices = @transform_6, window_bounds = array<i64: 4, 8>}, {transform_indices = @transform_7, window_bounds = array<i64: 20, 128>}]} {
    %c0 = arith.constant 0 : index
    %c0_0 = arith.constant 0 : index
    %0 = vector.load %arg1[%c0, %c0_0] : memref<20x128xf32, #tpu.memory_space<vmem>>, vector<20x128xf32>
    %1 = vector.extract_strided_slice %0 {offsets = [4, 0], sizes = [8, 128], strides = [1, 1]} : vector<20x128xf32> to vector<8x128xf32>
    %2 = vector.extract_strided_slice %0 {offsets = [12, 0], sizes = [8, 128], strides = [1, 1]} : vector<20x128xf32> to vector<8x128xf32>
    %c0_1 = arith.constant 0 : index
    %c0_2 = arith.constant 0 : index
    %c0_3 = arith.constant 0 : index
    %3 = vector.load %arg2[%c0_1, %c0_2, %c0_3] : memref<1x128x128xbf16, #tpu.memory_space<vmem>>, vector<1x128x128xbf16>
    %4 = vector.shape_cast %3 : vector<1x128x128xbf16> to vector<128x128xbf16>
    %c0_4 = arith.constant 0 : index
    %c0_5 = arith.constant 0 : index
    %5 = vector.load %arg6[%c0_4, %c0_5] : memref<88x128xf32, #tpu.memory_space<vmem>>, vector<4x128xf32>
    %6 = arith.truncf %0 : vector<20x128xf32> to vector<20x128xbf16>
    %cst = arith.constant dense<0.000000e+00> : vector<20x128xf32>
    %7 = tpu.matmul %6, %4, %cst {dimension_numbers = #tpu.dot_dimension_numbers<[1], [0], [0], [1], [0, 0, 1, 1], [], []>} : vector<20x128xbf16>, vector<128x128xbf16>, vector<20x128xf32> -> vector<20x128xf32>
    %8 = vector.extract_strided_slice %0 {offsets = [0, 0], sizes = [4, 128], strides = [1, 1]} : vector<20x128xf32> to vector<4x128xf32>
    %9 = vector.extract_strided_slice %7 {offsets = [0, 0], sizes = [4, 128], strides = [1, 1]} : vector<20x128xf32> to vector<4x128xf32>
    %10 = vector.extract_strided_slice %0 {offsets = [12, 0], sizes = [8, 128], strides = [1, 1]} : vector<20x128xf32> to vector<8x128xf32>
    %11 = vector.extract_strided_slice %7 {offsets = [12, 0], sizes = [8, 128], strides = [1, 1]} : vector<20x128xf32> to vector<8x128xf32>
    %12 = vector.extract_strided_slice %0 {offsets = [0, 0], sizes = [12, 128], strides = [1, 1]} : vector<20x128xf32> to vector<12x128xf32>
    %13 = vector.extract_strided_slice %7 {offsets = [0, 0], sizes = [12, 128], strides = [1, 1]} : vector<20x128xf32> to vector<12x128xf32>
    %14 = tpu.concatenate %12, %13 in 0 : vector<12x128xf32>, vector<12x128xf32> -> vector<24x128xf32>
    %c8 = arith.constant 8 : index
    %c0_6 = arith.constant 0 : index
    %15 = vector.load %arg6[%c8, %c0_6] : memref<88x128xf32, #tpu.memory_space<vmem>>, vector<16x128xf32>
    %c24 = arith.constant 24 : index
    %c0_7 = arith.constant 0 : index
    %16 = vector.load %arg6[%c24, %c0_7] : memref<88x128xf32, #tpu.memory_space<vmem>>, vector<8x128xf32>
    %c0_8 = arith.constant 0 : index
    %c0_9 = arith.constant 0 : index
    %17 = vector.load %arg3[%c0_8, %c0_9] : memref<96x24xbf16, #tpu.memory_space<vmem>>, vector<64x24xbf16>
    %c64 = arith.constant 64 : index
    %c0_10 = arith.constant 0 : index
    %18 = vector.load %arg3[%c64, %c0_10] : memref<96x24xbf16, #tpu.memory_space<vmem>>, vector<32x24xbf16>
    %19 = arith.truncf %14 : vector<24x128xf32> to vector<24x128xbf16>
    %cst_11 = arith.constant dense<0.000000e+00> : vector<64x128xf32>
    %20 = tpu.matmul %17, %19, %cst_11 {dimension_numbers = #tpu.dot_dimension_numbers<[1], [0], [0], [1], [0, 0, 1, 1], [], []>} : vector<64x24xbf16>, vector<24x128xbf16>, vector<64x128xf32> -> vector<64x128xf32>
    %21 = vector.extract_strided_slice %20 {offsets = [0, 0], sizes = [16, 128], strides = [1, 1]} : vector<64x128xf32> to vector<16x128xf32>
    %22 = vector.extract_strided_slice %5 {offsets = [0, 0], sizes = [1, 128], strides = [1, 1]} : vector<4x128xf32> to vector<1x128xf32>
    %23 = vector.broadcast %22 : vector<1x128xf32> to vector<16x128xf32>
    %24 = arith.mulf %21, %23 : vector<16x128xf32>
    %25 = vector.extract_strided_slice %20 {offsets = [16, 0], sizes = [16, 128], strides = [1, 1]} : vector<64x128xf32> to vector<16x128xf32>
    %26 = vector.extract_strided_slice %5 {offsets = [1, 0], sizes = [1, 128], strides = [1, 1]} : vector<4x128xf32> to vector<1x128xf32>
    %27 = vector.broadcast %26 : vector<1x128xf32> to vector<16x128xf32>
    %28 = arith.mulf %25, %27 : vector<16x128xf32>
    %29 = arith.addf %24, %28 : vector<16x128xf32>
    %30 = vector.extract_strided_slice %20 {offsets = [32, 0], sizes = [16, 128], strides = [1, 1]} : vector<64x128xf32> to vector<16x128xf32>
    %31 = vector.extract_strided_slice %5 {offsets = [2, 0], sizes = [1, 128], strides = [1, 1]} : vector<4x128xf32> to vector<1x128xf32>
    %32 = vector.broadcast %31 : vector<1x128xf32> to vector<16x128xf32>
    %33 = arith.mulf %30, %32 : vector<16x128xf32>
    %34 = arith.addf %29, %33 : vector<16x128xf32>
    %35 = vector.extract_strided_slice %20 {offsets = [48, 0], sizes = [16, 128], strides = [1, 1]} : vector<64x128xf32> to vector<16x128xf32>
    %36 = vector.extract_strided_slice %5 {offsets = [3, 0], sizes = [1, 128], strides = [1, 1]} : vector<4x128xf32> to vector<1x128xf32>
    %37 = vector.broadcast %36 : vector<1x128xf32> to vector<16x128xf32>
    %38 = arith.mulf %35, %37 : vector<16x128xf32>
    %39 = arith.addf %34, %38 : vector<16x128xf32>
    %40 = arith.addf %39, %15 : vector<16x128xf32>
    %41 = arith.negf %40 : vector<16x128xf32>
    %42 = math.exp %41 : vector<16x128xf32>
    %cst_12 = arith.constant 1.000000e+00 : f32
    %43 = vector.broadcast %cst_12 : f32 to vector<16x128xf32>
    %44 = arith.addf %43, %42 : vector<16x128xf32>
    %45 = arith.divf %43, %44 : vector<16x128xf32>
    %46 = vector.extract_strided_slice %45 {offsets = [0, 0], sizes = [8, 128], strides = [1, 1]} : vector<16x128xf32> to vector<8x128xf32>
    %47 = vector.extract_strided_slice %45 {offsets = [8, 0], sizes = [8, 128], strides = [1, 1]} : vector<16x128xf32> to vector<8x128xf32>
    %48 = arith.mulf %47, %1 : vector<8x128xf32>
    %49 = arith.truncf %48 : vector<8x128xf32> to vector<8x128xbf16>
    %cst_13 = arith.constant dense<0.000000e+00> : vector<8x128xf32>
    %50 = tpu.matmul %49, %4, %cst_13 {dimension_numbers = #tpu.dot_dimension_numbers<[1], [0], [0], [1], [0, 0, 1, 1], [], []>} : vector<8x128xbf16>, vector<128x128xbf16>, vector<8x128xf32> -> vector<8x128xf32>
    %51 = tpu.concatenate %8, %48 in 0 : vector<4x128xf32>, vector<8x128xf32> -> vector<12x128xf32>
    %52 = tpu.concatenate %9, %50 in 0 : vector<4x128xf32>, vector<8x128xf32> -> vector<12x128xf32>
    %53 = tpu.concatenate %51, %52 in 0 : vector<12x128xf32>, vector<12x128xf32> -> vector<24x128xf32>
    %54 = arith.truncf %53 : vector<24x128xf32> to vector<24x128xbf16>
    %cst_14 = arith.constant dense<0.000000e+00> : vector<32x128xf32>
    %55 = tpu.matmul %18, %54, %cst_14 {dimension_numbers = #tpu.dot_dimension_numbers<[1], [0], [0], [1], [0, 0, 1, 1], [], []>} : vector<32x24xbf16>, vector<24x128xbf16>, vector<32x128xf32> -> vector<32x128xf32>
    %56 = vector.extract_strided_slice %55 {offsets = [0, 0], sizes = [8, 128], strides = [1, 1]} : vector<32x128xf32> to vector<8x128xf32>
    %57 = vector.extract_strided_slice %5 {offsets = [0, 0], sizes = [1, 128], strides = [1, 1]} : vector<4x128xf32> to vector<1x128xf32>
    %58 = vector.broadcast %57 : vector<1x128xf32> to vector<8x128xf32>
    %59 = arith.mulf %56, %58 : vector<8x128xf32>
    %60 = vector.extract_strided_slice %55 {offsets = [8, 0], sizes = [8, 128], strides = [1, 1]} : vector<32x128xf32> to vector<8x128xf32>
    %61 = vector.extract_strided_slice %5 {offsets = [1, 0], sizes = [1, 128], strides = [1, 1]} : vector<4x128xf32> to vector<1x128xf32>
    %62 = vector.broadcast %61 : vector<1x128xf32> to vector<8x128xf32>
    %63 = arith.mulf %60, %62 : vector<8x128xf32>
    %64 = arith.addf %59, %63 : vector<8x128xf32>
    %65 = vector.extract_strided_slice %55 {offsets = [16, 0], sizes = [8, 128], strides = [1, 1]} : vector<32x128xf32> to vector<8x128xf32>
    %66 = vector.extract_strided_slice %5 {offsets = [2, 0], sizes = [1, 128], strides = [1, 1]} : vector<4x128xf32> to vector<1x128xf32>
    %67 = vector.broadcast %66 : vector<1x128xf32> to vector<8x128xf32>
    %68 = arith.mulf %65, %67 : vector<8x128xf32>
    %69 = arith.addf %64, %68 : vector<8x128xf32>
    %70 = vector.extract_strided_slice %55 {offsets = [24, 0], sizes = [8, 128], strides = [1, 1]} : vector<32x128xf32> to vector<8x128xf32>
    %71 = vector.extract_strided_slice %5 {offsets = [3, 0], sizes = [1, 128], strides = [1, 1]} : vector<4x128xf32> to vector<1x128xf32>
    %72 = vector.broadcast %71 : vector<1x128xf32> to vector<8x128xf32>
    %73 = arith.mulf %70, %72 : vector<8x128xf32>
    %74 = arith.addf %69, %73 : vector<8x128xf32>
    %75 = arith.addf %74, %16 : vector<8x128xf32>
    %76 = math.tanh %75 : vector<8x128xf32>
    %77 = arith.mulf %46, %1 : vector<8x128xf32>
    %cst_15 = arith.constant 1.000000e+00 : f32
    %78 = vector.broadcast %cst_15 : f32 to vector<8x128xf32>
    %79 = arith.subf %78, %46 : vector<8x128xf32>
    %80 = arith.mulf %79, %76 : vector<8x128xf32>
    %81 = arith.addf %77, %80 : vector<8x128xf32>
    %82 = arith.truncf %81 : vector<8x128xf32> to vector<8x128xbf16>
    %cst_16 = arith.constant dense<0.000000e+00> : vector<8x128xf32>
    %83 = tpu.matmul %82, %4, %cst_16 {dimension_numbers = #tpu.dot_dimension_numbers<[1], [0], [0], [1], [0, 0, 1, 1], [], []>} : vector<8x128xbf16>, vector<128x128xbf16>, vector<8x128xf32> -> vector<8x128xf32>
    %c32 = arith.constant 32 : index
    %c0_17 = arith.constant 0 : index
    %84 = vector.load %arg6[%c32, %c0_17] : memref<88x128xf32, #tpu.memory_space<vmem>>, vector<16x128xf32>
    %c48 = arith.constant 48 : index
    %c0_18 = arith.constant 0 : index
    %85 = vector.load %arg6[%c48, %c0_18] : memref<88x128xf32, #tpu.memory_space<vmem>>, vector<8x128xf32>
    %c0_19 = arith.constant 0 : index
    %c0_20 = arith.constant 0 : index
    %86 = vector.load %arg4[%c0_19, %c0_20] : memref<96x32xbf16, #tpu.memory_space<vmem>>, vector<64x32xbf16>
    %c64_21 = arith.constant 64 : index
    %c0_22 = arith.constant 0 : index
    %87 = vector.load %arg4[%c64_21, %c0_22] : memref<96x32xbf16, #tpu.memory_space<vmem>>, vector<32x32xbf16>
    %88 = tpu.concatenate %81, %10 in 0 : vector<8x128xf32>, vector<8x128xf32> -> vector<16x128xf32>
    %89 = tpu.concatenate %83, %11 in 0 : vector<8x128xf32>, vector<8x128xf32> -> vector<16x128xf32>
    %90 = tpu.concatenate %88, %89 in 0 : vector<16x128xf32>, vector<16x128xf32> -> vector<32x128xf32>
    %91 = arith.truncf %90 : vector<32x128xf32> to vector<32x128xbf16>
    %cst_23 = arith.constant dense<0.000000e+00> : vector<64x128xf32>
    %92 = tpu.matmul %86, %91, %cst_23 {dimension_numbers = #tpu.dot_dimension_numbers<[1], [0], [0], [1], [0, 0, 1, 1], [], []>} : vector<64x32xbf16>, vector<32x128xbf16>, vector<64x128xf32> -> vector<64x128xf32>
    %93 = vector.extract_strided_slice %92 {offsets = [0, 0], sizes = [16, 128], strides = [1, 1]} : vector<64x128xf32> to vector<16x128xf32>
    %94 = vector.extract_strided_slice %5 {offsets = [0, 0], sizes = [1, 128], strides = [1, 1]} : vector<4x128xf32> to vector<1x128xf32>
    %95 = vector.broadcast %94 : vector<1x128xf32> to vector<16x128xf32>
    %96 = arith.mulf %93, %95 : vector<16x128xf32>
    %97 = vector.extract_strided_slice %92 {offsets = [16, 0], sizes = [16, 128], strides = [1, 1]} : vector<64x128xf32> to vector<16x128xf32>
    %98 = vector.extract_strided_slice %5 {offsets = [1, 0], sizes = [1, 128], strides = [1, 1]} : vector<4x128xf32> to vector<1x128xf32>
    %99 = vector.broadcast %98 : vector<1x128xf32> to vector<16x128xf32>
    %100 = arith.mulf %97, %99 : vector<16x128xf32>
    %101 = arith.addf %96, %100 : vector<16x128xf32>
    %102 = vector.extract_strided_slice %92 {offsets = [32, 0], sizes = [16, 128], strides = [1, 1]} : vector<64x128xf32> to vector<16x128xf32>
    %103 = vector.extract_strided_slice %5 {offsets = [2, 0], sizes = [1, 128], strides = [1, 1]} : vector<4x128xf32> to vector<1x128xf32>
    %104 = vector.broadcast %103 : vector<1x128xf32> to vector<16x128xf32>
    %105 = arith.mulf %102, %104 : vector<16x128xf32>
    %106 = arith.addf %101, %105 : vector<16x128xf32>
    %107 = vector.extract_strided_slice %92 {offsets = [48, 0], sizes = [16, 128], strides = [1, 1]} : vector<64x128xf32> to vector<16x128xf32>
    %108 = vector.extract_strided_slice %5 {offsets = [3, 0], sizes = [1, 128], strides = [1, 1]} : vector<4x128xf32> to vector<1x128xf32>
    %109 = vector.broadcast %108 : vector<1x128xf32> to vector<16x128xf32>
    %110 = arith.mulf %107, %109 : vector<16x128xf32>
    %111 = arith.addf %106, %110 : vector<16x128xf32>
    %112 = arith.addf %111, %84 : vector<16x128xf32>
    %113 = arith.negf %112 : vector<16x128xf32>
    %114 = math.exp %113 : vector<16x128xf32>
    %cst_24 = arith.constant 1.000000e+00 : f32
    %115 = vector.broadcast %cst_24 : f32 to vector<16x128xf32>
    %116 = arith.addf %115, %114 : vector<16x128xf32>
    %117 = arith.divf %115, %116 : vector<16x128xf32>
    %118 = vector.extract_strided_slice %117 {offsets = [0, 0], sizes = [8, 128], strides = [1, 1]} : vector<16x128xf32> to vector<8x128xf32>
    %119 = vector.extract_strided_slice %117 {offsets = [8, 0], sizes = [8, 128], strides = [1, 1]} : vector<16x128xf32> to vector<8x128xf32>
    %120 = arith.mulf %119, %2 : vector<8x128xf32>
    %121 = arith.truncf %120 : vector<8x128xf32> to vector<8x128xbf16>
    %cst_25 = arith.constant dense<0.000000e+00> : vector<8x128xf32>
    %122 = tpu.matmul %121, %4, %cst_25 {dimension_numbers = #tpu.dot_dimension_numbers<[1], [0], [0], [1], [0, 0, 1, 1], [], []>} : vector<8x128xbf16>, vector<128x128xbf16>, vector<8x128xf32> -> vector<8x128xf32>
    %123 = tpu.concatenate %81, %120 in 0 : vector<8x128xf32>, vector<8x128xf32> -> vector<16x128xf32>
    %124 = tpu.concatenate %83, %122 in 0 : vector<8x128xf32>, vector<8x128xf32> -> vector<16x128xf32>
    %125 = tpu.concatenate %123, %124 in 0 : vector<16x128xf32>, vector<16x128xf32> -> vector<32x128xf32>
    %126 = arith.truncf %125 : vector<32x128xf32> to vector<32x128xbf16>
    %cst_26 = arith.constant dense<0.000000e+00> : vector<32x128xf32>
    %127 = tpu.matmul %87, %126, %cst_26 {dimension_numbers = #tpu.dot_dimension_numbers<[1], [0], [0], [1], [0, 0, 1, 1], [], []>} : vector<32x32xbf16>, vector<32x128xbf16>, vector<32x128xf32> -> vector<32x128xf32>
    %128 = vector.extract_strided_slice %127 {offsets = [0, 0], sizes = [8, 128], strides = [1, 1]} : vector<32x128xf32> to vector<8x128xf32>
    %129 = vector.extract_strided_slice %5 {offsets = [0, 0], sizes = [1, 128], strides = [1, 1]} : vector<4x128xf32> to vector<1x128xf32>
    %130 = vector.broadcast %129 : vector<1x128xf32> to vector<8x128xf32>
    %131 = arith.mulf %128, %130 : vector<8x128xf32>
    %132 = vector.extract_strided_slice %127 {offsets = [8, 0], sizes = [8, 128], strides = [1, 1]} : vector<32x128xf32> to vector<8x128xf32>
    %133 = vector.extract_strided_slice %5 {offsets = [1, 0], sizes = [1, 128], strides = [1, 1]} : vector<4x128xf32> to vector<1x128xf32>
    %134 = vector.broadcast %133 : vector<1x128xf32> to vector<8x128xf32>
    %135 = arith.mulf %132, %134 : vector<8x128xf32>
    %136 = arith.addf %131, %135 : vector<8x128xf32>
    %137 = vector.extract_strided_slice %127 {offsets = [16, 0], sizes = [8, 128], strides = [1, 1]} : vector<32x128xf32> to vector<8x128xf32>
    %138 = vector.extract_strided_slice %5 {offsets = [2, 0], sizes = [1, 128], strides = [1, 1]} : vector<4x128xf32> to vector<1x128xf32>
    %139 = vector.broadcast %138 : vector<1x128xf32> to vector<8x128xf32>
    %140 = arith.mulf %137, %139 : vector<8x128xf32>
    %141 = arith.addf %136, %140 : vector<8x128xf32>
    %142 = vector.extract_strided_slice %127 {offsets = [24, 0], sizes = [8, 128], strides = [1, 1]} : vector<32x128xf32> to vector<8x128xf32>
    %143 = vector.extract_strided_slice %5 {offsets = [3, 0], sizes = [1, 128], strides = [1, 1]} : vector<4x128xf32> to vector<1x128xf32>
    %144 = vector.broadcast %143 : vector<1x128xf32> to vector<8x128xf32>
    %145 = arith.mulf %142, %144 : vector<8x128xf32>
    %146 = arith.addf %141, %145 : vector<8x128xf32>
    %147 = arith.addf %146, %85 : vector<8x128xf32>
    %148 = math.tanh %147 : vector<8x128xf32>
    %149 = arith.mulf %118, %2 : vector<8x128xf32>
    %cst_27 = arith.constant 1.000000e+00 : f32
    %150 = vector.broadcast %cst_27 : f32 to vector<8x128xf32>
    %151 = arith.subf %150, %118 : vector<8x128xf32>
    %152 = arith.mulf %151, %148 : vector<8x128xf32>
    %153 = arith.addf %149, %152 : vector<8x128xf32>
    %c56 = arith.constant 56 : index
    %c0_28 = arith.constant 0 : index
    %154 = vector.load %arg6[%c56, %c0_28] : memref<88x128xf32, #tpu.memory_space<vmem>>, vector<16x128xf32>
    %c72 = arith.constant 72 : index
    %c0_29 = arith.constant 0 : index
    %155 = vector.load %arg6[%c72, %c0_29] : memref<88x128xf32, #tpu.memory_space<vmem>>, vector<8x128xf32>
    %c0_30 = arith.constant 0 : index
    %c0_31 = arith.constant 0 : index
    %156 = vector.load %arg5[%c0_30, %c0_31] : memref<96x24xbf16, #tpu.memory_space<vmem>>, vector<64x24xbf16>
    %c64_32 = arith.constant 64 : index
    %c0_33 = arith.constant 0 : index
    %157 = vector.load %arg5[%c64_32, %c0_33] : memref<96x24xbf16, #tpu.memory_space<vmem>>, vector<32x24xbf16>
    %158 = tpu.concatenate %8, %10 in 0 : vector<4x128xf32>, vector<8x128xf32> -> vector<12x128xf32>
    %159 = tpu.concatenate %9, %11 in 0 : vector<4x128xf32>, vector<8x128xf32> -> vector<12x128xf32>
    %160 = tpu.concatenate %158, %159 in 0 : vector<12x128xf32>, vector<12x128xf32> -> vector<24x128xf32>
    %161 = arith.truncf %160 : vector<24x128xf32> to vector<24x128xbf16>
    %cst_34 = arith.constant dense<0.000000e+00> : vector<64x128xf32>
    %162 = tpu.matmul %156, %161, %cst_34 {dimension_numbers = #tpu.dot_dimension_numbers<[1], [0], [0], [1], [0, 0, 1, 1], [], []>} : vector<64x24xbf16>, vector<24x128xbf16>, vector<64x128xf32> -> vector<64x128xf32>
    %163 = vector.extract_strided_slice %162 {offsets = [0, 0], sizes = [16, 128], strides = [1, 1]} : vector<64x128xf32> to vector<16x128xf32>
    %164 = vector.extract_strided_slice %5 {offsets = [0, 0], sizes = [1, 128], strides = [1, 1]} : vector<4x128xf32> to vector<1x128xf32>
    %165 = vector.broadcast %164 : vector<1x128xf32> to vector<16x128xf32>
    %166 = arith.mulf %163, %165 : vector<16x128xf32>
    %167 = vector.extract_strided_slice %162 {offsets = [16, 0], sizes = [16, 128], strides = [1, 1]} : vector<64x128xf32> to vector<16x128xf32>
    %168 = vector.extract_strided_slice %5 {offsets = [1, 0], sizes = [1, 128], strides = [1, 1]} : vector<4x128xf32> to vector<1x128xf32>
    %169 = vector.broadcast %168 : vector<1x128xf32> to vector<16x128xf32>
    %170 = arith.mulf %167, %169 : vector<16x128xf32>
    %171 = arith.addf %166, %170 : vector<16x128xf32>
    %172 = vector.extract_strided_slice %162 {offsets = [32, 0], sizes = [16, 128], strides = [1, 1]} : vector<64x128xf32> to vector<16x128xf32>
    %173 = vector.extract_strided_slice %5 {offsets = [2, 0], sizes = [1, 128], strides = [1, 1]} : vector<4x128xf32> to vector<1x128xf32>
    %174 = vector.broadcast %173 : vector<1x128xf32> to vector<16x128xf32>
    %175 = arith.mulf %172, %174 : vector<16x128xf32>
    %176 = arith.addf %171, %175 : vector<16x128xf32>
    %177 = vector.extract_strided_slice %162 {offsets = [48, 0], sizes = [16, 128], strides = [1, 1]} : vector<64x128xf32> to vector<16x128xf32>
    %178 = vector.extract_strided_slice %5 {offsets = [3, 0], sizes = [1, 128], strides = [1, 1]} : vector<4x128xf32> to vector<1x128xf32>
    %179 = vector.broadcast %178 : vector<1x128xf32> to vector<16x128xf32>
    %180 = arith.mulf %177, %179 : vector<16x128xf32>
    %181 = arith.addf %176, %180 : vector<16x128xf32>
    %182 = arith.addf %181, %154 : vector<16x128xf32>
    %183 = arith.negf %182 : vector<16x128xf32>
    %184 = math.exp %183 : vector<16x128xf32>
    %cst_35 = arith.constant 1.000000e+00 : f32
    %185 = vector.broadcast %cst_35 : f32 to vector<16x128xf32>
    %186 = arith.addf %185, %184 : vector<16x128xf32>
    %187 = arith.divf %185, %186 : vector<16x128xf32>
    %188 = vector.extract_strided_slice %187 {offsets = [0, 0], sizes = [8, 128], strides = [1, 1]} : vector<16x128xf32> to vector<8x128xf32>
    %189 = vector.extract_strided_slice %187 {offsets = [8, 0], sizes = [8, 128], strides = [1, 1]} : vector<16x128xf32> to vector<8x128xf32>
    %190 = arith.mulf %189, %2 : vector<8x128xf32>
    %191 = arith.truncf %190 : vector<8x128xf32> to vector<8x128xbf16>
    %cst_36 = arith.constant dense<0.000000e+00> : vector<8x128xf32>
    %192 = tpu.matmul %191, %4, %cst_36 {dimension_numbers = #tpu.dot_dimension_numbers<[1], [0], [0], [1], [0, 0, 1, 1], [], []>} : vector<8x128xbf16>, vector<128x128xbf16>, vector<8x128xf32> -> vector<8x128xf32>
    %193 = tpu.concatenate %8, %190 in 0 : vector<4x128xf32>, vector<8x128xf32> -> vector<12x128xf32>
    %194 = tpu.concatenate %9, %192 in 0 : vector<4x128xf32>, vector<8x128xf32> -> vector<12x128xf32>
    %195 = tpu.concatenate %193, %194 in 0 : vector<12x128xf32>, vector<12x128xf32> -> vector<24x128xf32>
    %196 = arith.truncf %195 : vector<24x128xf32> to vector<24x128xbf16>
    %cst_37 = arith.constant dense<0.000000e+00> : vector<32x128xf32>
    %197 = tpu.matmul %157, %196, %cst_37 {dimension_numbers = #tpu.dot_dimension_numbers<[1], [0], [0], [1], [0, 0, 1, 1], [], []>} : vector<32x24xbf16>, vector<24x128xbf16>, vector<32x128xf32> -> vector<32x128xf32>
    %198 = vector.extract_strided_slice %197 {offsets = [0, 0], sizes = [8, 128], strides = [1, 1]} : vector<32x128xf32> to vector<8x128xf32>
    %199 = vector.extract_strided_slice %5 {offsets = [0, 0], sizes = [1, 128], strides = [1, 1]} : vector<4x128xf32> to vector<1x128xf32>
    %200 = vector.broadcast %199 : vector<1x128xf32> to vector<8x128xf32>
    %201 = arith.mulf %198, %200 : vector<8x128xf32>
    %202 = vector.extract_strided_slice %197 {offsets = [8, 0], sizes = [8, 128], strides = [1, 1]} : vector<32x128xf32> to vector<8x128xf32>
    %203 = vector.extract_strided_slice %5 {offsets = [1, 0], sizes = [1, 128], strides = [1, 1]} : vector<4x128xf32> to vector<1x128xf32>
    %204 = vector.broadcast %203 : vector<1x128xf32> to vector<8x128xf32>
    %205 = arith.mulf %202, %204 : vector<8x128xf32>
    %206 = arith.addf %201, %205 : vector<8x128xf32>
    %207 = vector.extract_strided_slice %197 {offsets = [16, 0], sizes = [8, 128], strides = [1, 1]} : vector<32x128xf32> to vector<8x128xf32>
    %208 = vector.extract_strided_slice %5 {offsets = [2, 0], sizes = [1, 128], strides = [1, 1]} : vector<4x128xf32> to vector<1x128xf32>
    %209 = vector.broadcast %208 : vector<1x128xf32> to vector<8x128xf32>
    %210 = arith.mulf %207, %209 : vector<8x128xf32>
    %211 = arith.addf %206, %210 : vector<8x128xf32>
    %212 = vector.extract_strided_slice %197 {offsets = [24, 0], sizes = [8, 128], strides = [1, 1]} : vector<32x128xf32> to vector<8x128xf32>
    %213 = vector.extract_strided_slice %5 {offsets = [3, 0], sizes = [1, 128], strides = [1, 1]} : vector<4x128xf32> to vector<1x128xf32>
    %214 = vector.broadcast %213 : vector<1x128xf32> to vector<8x128xf32>
    %215 = arith.mulf %212, %214 : vector<8x128xf32>
    %216 = arith.addf %211, %215 : vector<8x128xf32>
    %217 = arith.addf %216, %155 : vector<8x128xf32>
    %218 = math.tanh %217 : vector<8x128xf32>
    %219 = arith.mulf %188, %2 : vector<8x128xf32>
    %cst_38 = arith.constant 1.000000e+00 : f32
    %220 = vector.broadcast %cst_38 : f32 to vector<8x128xf32>
    %221 = arith.subf %220, %188 : vector<8x128xf32>
    %222 = arith.mulf %221, %218 : vector<8x128xf32>
    %223 = arith.addf %219, %222 : vector<8x128xf32>
    %cst_39 = arith.constant 0.699999988 : f32
    %224 = vector.broadcast %cst_39 : f32 to vector<8x128xf32>
    %225 = arith.mulf %224, %153 : vector<8x128xf32>
    %cst_40 = arith.constant 3.000000e-01 : f32
    %226 = vector.broadcast %cst_40 : f32 to vector<8x128xf32>
    %227 = arith.mulf %226, %223 : vector<8x128xf32>
    %228 = arith.addf %225, %227 : vector<8x128xf32>
    %c0_41 = arith.constant 0 : index
    %c0_42 = arith.constant 0 : index
    %229 = vector.load %arg7[%c0_41, %c0_42] : memref<4x8xbf16, #tpu.memory_space<vmem>>, vector<4x8xbf16>
    %230 = arith.truncf %228 : vector<8x128xf32> to vector<8x128xbf16>
    %cst_43 = arith.constant dense<0.000000e+00> : vector<4x128xf32>
    %231 = tpu.matmul %229, %230, %cst_43 {dimension_numbers = #tpu.dot_dimension_numbers<[1], [0], [0], [1], [0, 0, 1, 1], [], []>} : vector<4x8xbf16>, vector<8x128xbf16>, vector<4x128xf32> -> vector<4x128xf32>
    %c80 = arith.constant 80 : index
    %c0_44 = arith.constant 0 : index
    %232 = vector.load %arg6[%c80, %c0_44] : memref<88x128xf32, #tpu.memory_space<vmem>>, vector<4x128xf32>
    %233 = arith.addf %231, %232 : vector<4x128xf32>
    %234 = math.tanh %233 : vector<4x128xf32>
    %c0_45 = arith.constant 0 : index
    %c0_46 = arith.constant 0 : index
    %235 = vector.load %arg8[%c0_45, %c0_46] : memref<20x128xf32, #tpu.memory_space<vmem>>, vector<8x128xf32>
    tpu.vector_store %arg8[%c0_45, %c0_46], %81 {strides = array<i32>} : memref<20x128xf32, #tpu.memory_space<vmem>>, vector<8x128xf32>,
    %c8_47 = arith.constant 8 : index
    %c0_48 = arith.constant 0 : index
    %236 = vector.load %arg8[%c8_47, %c0_48] : memref<20x128xf32, #tpu.memory_space<vmem>>, vector<8x128xf32>
    tpu.vector_store %arg8[%c8_47, %c0_48], %228 {strides = array<i32>} : memref<20x128xf32, #tpu.memory_space<vmem>>, vector<8x128xf32>,
    %c16 = arith.constant 16 : index
    %c0_49 = arith.constant 0 : index
    %237 = vector.load %arg8[%c16, %c0_49] : memref<20x128xf32, #tpu.memory_space<vmem>>, vector<4x128xf32>
    tpu.vector_store %arg8[%c16, %c0_49], %234 {strides = array<i32>} : memref<20x128xf32, #tpu.memory_space<vmem>>, vector<4x128xf32>,
    return
  }
  func.func @transform_0(%arg0: i32) -> (i32, i32) {
    %c0_i32 = arith.constant 0 : i32
    %c0_i32_0 = arith.constant 0 : i32
    return %c0_i32, %arg0 : i32, i32
  }
  func.func @transform_1(%arg0: i32) -> (i32, i32, i32) {
    %c0_i32 = arith.constant 0 : i32
    %c0_i32_0 = arith.constant 0 : i32
    %c0_i32_1 = arith.constant 0 : i32
    %c0_i32_2 = arith.constant 0 : i32
    return %c0_i32, %c0_i32_0, %c0_i32_1 : i32, i32, i32
  }
  func.func @transform_2(%arg0: i32) -> (i32, i32) {
    %c0_i32 = arith.constant 0 : i32
    %c0_i32_0 = arith.constant 0 : i32
    %c0_i32_1 = arith.constant 0 : i32
    return %c0_i32, %c0_i32_0 : i32, i32
  }
  func.func @transform_3(%arg0: i32) -> (i32, i32) {
    %c0_i32 = arith.constant 0 : i32
    %c0_i32_0 = arith.constant 0 : i32
    %c0_i32_1 = arith.constant 0 : i32
    return %c0_i32, %c0_i32_0 : i32, i32
  }
  func.func @transform_4(%arg0: i32) -> (i32, i32) {
    %c0_i32 = arith.constant 0 : i32
    %c0_i32_0 = arith.constant 0 : i32
    %c0_i32_1 = arith.constant 0 : i32
    return %c0_i32, %c0_i32_0 : i32, i32
  }
  func.func @transform_5(%arg0: i32) -> (i32, i32) {
    %c0_i32 = arith.constant 0 : i32
    %c0_i32_0 = arith.constant 0 : i32
    %c0_i32_1 = arith.constant 0 : i32
    return %c0_i32, %c0_i32_0 : i32, i32
  }
  func.func @transform_6(%arg0: i32) -> (i32, i32) {
    %c0_i32 = arith.constant 0 : i32
    %c0_i32_0 = arith.constant 0 : i32
    %c0_i32_1 = arith.constant 0 : i32
    return %c0_i32, %c0_i32_0 : i32, i32
  }
  func.func @transform_7(%arg0: i32) -> (i32, i32) {
    %c0_i32 = arith.constant 0 : i32
    %c0_i32_0 = arith.constant 0 : i32
    return %c0_i32, %arg0 : i32, i32
  }
}

</mosaic_0001>

<bundles_post_ra>
// kernel: tpu_custom_call.1
= control target key start
LH: loop header
LB: loop body
LE: loop exit
PB: predicated region body
PF: predicated region fallthrough
CT: control target
= control target key end

     0   :  { %12 = vsyncpa [#allocation3], 0  ;;  %s2585_s0 = inlined_call_operand.hbm [shape: f32[20,256], index: 0, kind: input, shape index: {}]   ;;  %s2586_s1 = inlined_call_operand.vmem [shape: bf16[1,128,128], index: 1, kind: input, shape index: {}]   ;;  %s2587_s2 = inlined_call_operand.vmem [shape: bf16[96,24], index: 2, kind: input, shape index: {}]   ;;  %s2588_s3 = inlined_call_operand.vmem [shape: bf16[96,32], index: 3, kind: input, shape index: {}]   ;;  %s2589_s4 = inlined_call_operand.vmem [shape: bf16[96,24], index: 4, kind: input, shape index: {}]   ;;  %s2590_s5 = inlined_call_operand.vmem [shape: f32[88,128], index: 5, kind: input, shape index: {}]   ;;  %s2591_s6 = inlined_call_operand.vmem [shape: bf16[4,8], index: 6, kind: input, shape index: {}]   ;;  %s2592_s7 = inlined_call_operand.hbm [shape: f32[20,256], index: 7, kind: output, shape index: {}]  }
   0x1   :  { %14 = vsyncpa [#allocation3 + $0x1], 0 }
   0x2   :  { %15 = vsyncpa [#allocation4], 0 }
   0x3   :  { %17 = vsyncpa [#allocation4 + $0x1], 0  ;;  %s2047_s24 = smov 0   ;;  %s2049_s25 = smov 0  }
   0x4   :  { %s2051_s26 = smov 0   ;;  %s2053_s27 = smov 0  }
   0x5 LB: > { %s2068_s28 = sadd.s32 4294967295, %s1995_s27   ;;  %s1482_s29 = sadd.s32 4294967294, %s1995_s27   ;;  %s1995_s27 = sphi %s2053_s27, %s2607_s27   ;;  %s1991_s26 = sphi %s2051_s26, %s2606_s26   ;;  %s1987_s25 = sphi %s2049_s25, %s2605_s25   ;;  %s1983_s24 = sphi %s2047_s24, %s2604_s24  }
   0x6   : > { %s2072_s30 = sadd.s32 1, %s1995_s27   ;;  %s30_s8 = sadd.s32 1, %s1991_s26 }
   0x7   : > { %s27_s9 = ssub.s32 %s1995_s27, %s2072_s30  ;;  %p37_p0 = scmp.ne.s32.totalorder %s1991_s26, %s1987_s25 }
   0x8   : > { %p28_p1 = scmp.eq.s32.totalorder %s27_s9, 0  ;;  %p38_p2 = scmp.eq.s32.totalorder %s1995_s27, 0 }
   0x9   : > { %p43_p3 = scmp.ne.s32.totalorder %s1987_s25, %s1983_s24  ;;  %p44_p4 = scmp.eq.s32.totalorder %s2068_s28, 0 }
   0xa   : > { %s2084_s10 = scalar_select %p28_p1, %s1991_s26, %s30_s8  }
   0xb   : > { %p39_p5 = por %p38_p2, %p37_p0  ;;  %p2086_p6 = por %p44_p4, %p43_p3 }
   0xc   : > { %p193_p7 = scmp.eq.s32.totalorder %s2068_s28, 1  ;;  %p199_p8 = scmp.eq.s32.totalorder %s1482_s29, 1 }
   0xd   : > { %s2595_s11 = scalar_select %p2086_p6, 1, 0 }
   0xe   : > { %p1803_p10 = scmp.lt.s32.totalorder %s1995_s27, 2  ;;  %p2093_p11 = por %p193_p7, %p37_p0 }
   0xf   : > { %p2097_p12 = por %p199_p8, %p43_p3  ;;  %s237_s14 = sand.u32 1, %s1991_s26  }
  0x10   : > { %s2596_s12 = scalar_select %p2093_p11, 1, 0 }
  0x11   : > { %s2597_s13 = scalar_select %p2097_p12, 1, 0 }
  0x12   : > { %s1485_s15 = sshll.u32 %s1995_s27, 7  ;;  %s1789_s16 = smul.u32 24, %s237_s14 }
  0x13   : > { %s2106_s19 = scalar_lea.hbm %s2585_s0, %s1485_s15  ;;  %p2108_p13 = pnand %p1803_p10, %p39_p5 }
  0x14   : > { %s241_s21 = scalar_lea.vmem [#allocation2], %s1789_s16  ;;  %s2115_s23 = scalar_lea.sflag [#allocation3], %s237_s14 }
  0x15   : > { %s247_s22 = sshll.u32 %s241_s21, 4  ;;  %s1903_s29 = scalar_lea.hbm %s2106_s19, 384  ;;  %s2112_s22 = int_to_ptr.vmem [resolvable:$true] %s247_s22 }
  0x16   : > { %p1904_p1 = scmp.ne.s32.totalorder %s2106_s19, %s1903_s29  ;;  %p1905_p2 = pneg %p2108_p13 }
  0x17   : > { %s1908_s15 = scalar_lea.hbm %s2585_s0, 768  ;;  %p1909_p5 = scmp.lt.s32.totalorder %s2106_s19, %s2585_s0 }
  0x18   : > { %p1906_p3 = pnand %p1905_p2, %p1904_p1  ;;  %p1910_p7 = scmp.lt.s32.totalorder %s1908_s15, %s1903_s29 }
  0x1a   : > { %p1907_p4 = pneg %p1906_p3  ;;  %p1911_p8 = por %p1910_p7, %p1909_p5 }
  0x1c   : > { %p1912_p10 = pnand %p1911_p8, %p1907_p4 }
  0x1e   : > { %1915 = shalt.err (!%p1912_p10)
}
  0x1f   : > { %s1916_s14 = scalar_lea.vmem %s2112_s22, 384  ;;  %s1997_s16 = smov [#allocation2]  }
  0x20   : > { %p1917_p9 = scmp.ne.s32.totalorder %s2112_s22, %s1916_s14  ;;  %s1921_s21 = sshll.u32 %s1997_s16, 4  ;;  %s1922_s21 = int_to_ptr.vmem [resolvable:$false] %s1921_s21 }
  0x21   : > { %s1923_s8 = scalar_lea.vmem %s1922_s21, 768  ;;  %p1924_p3 = scmp.lt.s32.totalorder %s2112_s22, %s1922_s21 }
  0x22   : > { %p1919_p0 = pnand %p1917_p9, %p1905_p2  ;;  %p1925_p12 = scmp.lt.s32.totalorder %s1923_s8, %s1916_s14 }
  0x24   : > { %p1920_p1 = pneg %p1919_p0  ;;  %p1926_p11 = por %p1925_p12, %p1924_p3 }
  0x26   : > { %p1927_p6 = pnand %p1926_p11, %p1920_p1 }
  0x28   : > { %1930 = shalt.err (!%p1927_p6)
}
  0x29   : > { %s1998_s29 = smov 256   ;;  %s1999_s9 = smov 128  }
  0x2a   : > { %s2000_s15 = smov 8   ;;  %p255_p9 = scmp.lt.s32.totalorder %s1995_s27, 3 }
  0x2b   : > { %1798 = dma.hbm_to_vmem [thread:$0]  (!%p2108_p13), %s2106_s19, 384, %s2112_s22, %s2115_s23, %s1998_s29, %s1999_s9, %s2000_s15  }
  0x2c   : > { %p2599_p0 = scmp.ge.s32.totalorder %s1995_s27, 1 }
  0x2e   : > { %p256_p2 = pnand %p2599_p0, %p255_p9 }
  0x2f   : > { %s2140_s17 = sand.u32 (!%p256_p2), 1, %s1987_s25   ;;  %p2600_p6 = scmp.ne.s32.totalorder (!%p256_p2), %s2595_s11, 0 }
  0x30   : > { %259 = sbr.rel (%p256_p2) target bundleno = 2574 (0xa0e), region = 48  ;;  %s262_s14 = scalar_lea.sflag (!%p256_p2), [#allocation3], %s2140_s17 }
  0x31   : > { %s1790_s18 = smul.u32 (!%p256_p2), 24, %s2140_s17 }
  0x33   : > { %s265_s16 = scalar_lea.vmem (!%p256_p2), [#allocation2], %s1790_s18 }
  0x35   : > { %1974 = dma.done.wait (%p2600_p6), %s262_s14, 384  }
  0x36   : > { %1976 = vsyncadd (%p2600_p6), %s262_s14, 4294966912  ;;  %v2153_v0 = vld [vmem:[%s2586_s1 + $0x38] sm:$0xff]   ;;  %v2158_v1 = vld [vmem:[%s2586_s1 + $0x30] sm:$0xff]   ;;  %vm461_vm0 = vcmask 195584   ;;  %vm417_vm1 = vcmask 1043456   ;;  %v2001_v30 = vmov 0.0   ;;  %v542_v31 = vlaneseq }
  0x37   : > { %1619 = vmatprep.subr.bf16.mxu0 %v2153_v0  ;;  %v2166_v2 = vld [vmem:[%s2586_s1 + $0x28] sm:$0xff]   ;;  %v2173_v3 = vld [vmem:[%s2586_s1 + $0x20] sm:$0xff]   ;;  %v2184_v7 = vld [vmem:[%s2586_s1 + $0x18] sm:$0xff]   ;;  %vm2002_vm2 = vmmov 0   ;;  %s2351_s20 = scalar_lea.vmem [#allocation5], %s1790_s18  ;;  %vm818_vm3 = vcmask 261120  }
  0x38   : > { %1620 = vmatpush3.bf16.msra.mxu0 %v2153_v0  ;;  %v2175_v4 = vld [vmem:[%s265_s16] sm:$0xff]  ;;  %v2177_v5 = vld [vmem:[%s265_s16 + $0x8] sm:$0xff]  ;;  %v2191_v8 = vld [vmem:[%s2586_s1 + $0x10] sm:$0xff]   ;;  %v543_v32 = vshrl.u32 %v542_v31, 7  ;;  %vm1345_vm4 = vcmask 64512   ;;  %s1409_s8 = sshll.u32 %s2351_s20, 4  ;;  %s2536_s8 = int_to_ptr.vmem [resolvable:$true] %s1409_s8 }
  0x39   : > { %1621 = vmatprep.subr.bf16.mxu0 %v2158_v1  ;;  %v317_v6 = vpack.c.bf16 %v2177_v5, %v2175_v4  ;;  %v2198_v9 = vld [vmem:[%s2586_s1 + $0x8] sm:$0xff]   ;;  %v2207_v10 = vld [vmem:[%s2586_s1] sm:$0xff]   ;;  %v1855_v28 = vld [vmem:[%s2587_s2 + $0x10] sm:$0xff]   ;;  %s1538_s11 = sshll.u32 %s2068_s28, 7  ;;  %s1397_s15 = scalar_lea.sflag [#allocation4], %s2140_s17 }
  0x3a   : > { %v2210_v11 = vld [vmem:[%s265_s16 + $0x10] sm:$0xf]  ;;  %v1853_v13 = vld [vmem:[%s2587_s2] sm:$0xff]   ;;  %v1856_v29 = vld [vmem:[%s2587_s2 + $0x18] sm:$0xff]   ;;  %v550_v33 = vsub.s32 1, %v543_v32  ;;  %v544_v34 = vsub.s32 0, %v543_v32  ;;  %s2541_s9 = scalar_lea.hbm %s2592_s7, %s1538_s11 }
  0x3b   : > { %1635 = vmatprep.mubr.bf16.mxu0 %v317_v6  ;;  %v318_v12 = vpack.c.bf16 %v2210_v11, %v2210_v11  ;;  %1643 = vmatprep.mubr.msk.bf16.mxu1 %vm461_vm0, %v1853_v13  ;;  %v1854_v27 = vld [vmem:[%s2587_s2 + $0x8] sm:$0xff]   ;;  %v316_v35 = vld [vmem:[%s2590_s5] sm:$0xf]  ;;  %v558_v42 = vsub.s32 2, %v543_v32  ;;  %v566_v45 = vsub.s32 3, %v543_v32  ;;  %s1931_s14 = scalar_lea.vmem %s2536_s8, 384 }
  0x3c   : > { %1622 = vmatpush3.bf16.msra.mxu0 %v2158_v1  ;;  %v2273_v36 = vrot.slane %v316_v35, %v550_v33  ;;  %v2275_v37 = vrot.slane %v316_v35, %v544_v34  ;;  %v424_v57 = vld [vmem:[%s2590_s5 + $0x8] sm:$0xff]  ;;  %p1932_p11 = scmp.ne.s32.totalorder %s2536_s8, %s1931_s14  ;;  %p2601_p12 = scmp.ne.s32.totalorder %s2596_s12, 0 }
  0x3d   : > { %1623 = vmatprep.subr.bf16.mxu0 %v2166_v2  ;;  %v2279_v47 = vrot.slane %v316_v35, %v558_v42  ;;  %v2281_v49 = vrot.slane %v316_v35, %v566_v45  ;;  %v1857_v35 = vld [vmem:[%s2587_s2 + $0x20] sm:$0xff]   ;;  %s2003_s19 = smov [#allocation5]  }
  0x3e   : > { %p1933_p13 = pnand %p1932_p11, %p2601_p12  ;;  %s1935_s28 = sshll.u32 %s2003_s19, 4  ;;  %s1936_s28 = int_to_ptr.vmem [resolvable:$false] %s1935_s28 }
  0x3f   : > { %s1937_s22 = scalar_lea.vmem %s1936_s28, 768  ;;  %p1938_p5 = scmp.lt.s32.totalorder %s2536_s8, %s1936_s28 }
  0x40   : > { %1624 = vmatpush3.bf16.msra.mxu0 %v2166_v2  ;;  %p1934_p4 = pneg %p1933_p13  ;;  %p1939_p7 = scmp.lt.s32.totalorder %s1937_s22, %s1931_s14 }
  0x41   : > { %1625 = vmatprep.subr.bf16.mxu0 %v2173_v3 }
  0x42   : > { %p1940_p8 = por %p1939_p7, %p1938_p5 }
  0x44   : > { %1626 = vmatpush3.bf16.msra.mxu0 %v2173_v3  ;;  %p1941_p10 = pnand %p1940_p8, %p1934_p4 }
  0x45   : > { %1627 = vmatprep.subr.bf16.mxu0 %v2184_v7 }
  0x48   : > { %1628 = vmatpush3.bf16.msra.mxu0 %v2184_v7 }
  0x49   : > { %1629 = vmatprep.subr.bf16.mxu0 %v2191_v8 }
  0x4c   : > { %1630 = vmatpush3.bf16.msra.mxu0 %v2191_v8 }
  0x4d   : > { %1631 = vmatprep.subr.bf16.mxu0 %v2198_v9 }
  0x50   : > { %1632 = vmatpush3.bf16.msra.mxu0 %v2198_v9 }
  0x51   : > { %1633 = vmatprep.subr.bf16.mxu0 %v2207_v10 }
  0x54   : > { %1634 = vmatpush3.bf16.msra.mxu0 %v2207_v10 }
  0x57   : > { %1636 = vmatmul.mubr.bf16.vlgmr.msra.gmra.mxu0 %v318_v12  ;;  %v425_v12 = vld [vmem:[%s2590_s5 + $0x10] sm:$0xff] }
  0x58   : > { %1675 = vmatprep.mubr.msk.bf16.mxu0 %vm461_vm0, %v1857_v35 }
 0x117   : > { %v2220_v14 = vpop.f32.mrf.mxu0 }
 0x118   : > { %v793_v19 = vrot.slane %v2220_v14, 4  ;;  %v1865_v14 = vld [vmem:[%s2589_s4] sm:$0xff]  }
 0x119   : > { %v2222_v15 = vpop.f32.mrf.mxu0 }
 0x11a   : > { %v418_v17 = vrot.slane %v2222_v15, 4 }
 0x11b   : > { %v1638_v16 = vpop.f32.mrf.mxu0 }
 0x11c   : > { %v423_v22 = vsel %vm417_vm1, %v2177_v5, %v418_v17 }
 0x11d   : > { %v2225_v18 = vpop.f32.mrf.mxu0  ;;  %v439_v26 = vpack.c.bf16 %v423_v22, %v2175_v4 }
 0x11e   : > { %v419_v20 = vrot.slane %v2225_v18, 4 }
 0x120   : > { %v420_v21 = vsel %vm417_vm1, %v418_v17, %v419_v20  ;;  %v2235_v23 = vsel %vm417_vm1, %v419_v20, %v793_v19 }
 0x121   : > { %v440_v24 = vpack.c.bf16 %v420_v21, %v420_v21 }
 0x123   : > { %1785 = vmatprep.subr.msk.bf16.mxu1 %vm417_vm1, %v440_v24  ;;  %v475_v25 = vsel %vm417_vm1, %v440_v24, 0 }
 0x124   : > { %1640 = vmatpush3.bf16.msra.mxu1 %v475_v25 }
 0x125   : > { %1641 = vmatprep.subr.bf16.mxu1 %v439_v26 }
 0x128   : > { %1642 = vmatpush3.bf16.msra.mxu1 %v439_v26  ;;  %v588_v26 = vrot.slane %v2175_v4, 4 }
 0x129   : > { %1651 = vmatprep.subr.bf16.mxu1 %v2001_v30 }
 0x12b   : > { %1644 = vmatmul.mubr.msk.bf16.vlgmr.msra.gmra.mxu1 %vm461_vm0, %v1854_v27  ;;  %v589_v27 = vrot.slane %v2177_v5, 4 }
 0x12c   : > { %1647 = vmatprep.mubr.msk.bf16.mxu1 %vm461_vm0, %v1855_v28  ;;  %1652 = vmatpush3.bf16.msra.mxu1 %v2153_v0 }
 0x12d   : > { %1653 = vmatprep.subr.bf16.mxu1 %v2001_v30  ;;  %v590_v28 = vsel %vm417_vm1, %v588_v26, %v589_v27  ;;  %v1859_v26 = vld [vmem:[%s2588_s3] sm:$0xff]  }
 0x130   : > { %1654 = vmatpush3.bf16.msra.mxu1 %v2158_v1 }
 0x131   : > { %1655 = vmatprep.subr.bf16.mxu1 %v2001_v30 }
 0x133   : > { %1648 = vmatmul.mubr.msk.bf16.gmra.mxu1 %vm461_vm0, %v1856_v29 }
 0x134   : > { %1656 = vmatpush3.bf16.msra.mxu1 %v2166_v2  ;;  %1667 = vmatprep.mubr.msk.bf16.mxu1 %vm2002_vm2, %v2001_v30 }
 0x135   : > { %1657 = vmatprep.subr.bf16.mxu1 %v2001_v30 }
 0x138   : > { %1658 = vmatpush3.bf16.msra.mxu1 %v2173_v3 }
 0x139   : > { %1659 = vmatprep.subr.bf16.mxu1 %v2001_v30 }
 0x13c   : > { %1660 = vmatpush3.bf16.msra.mxu1 %v2184_v7 }
 0x13d   : > { %1661 = vmatprep.subr.bf16.mxu1 %v2001_v30 }
 0x140   : > { %1662 = vmatpush3.bf16.msra.mxu1 %v2191_v8 }
 0x141   : > { %1663 = vmatprep.subr.bf16.mxu1 %v2001_v30 }
 0x144   : > { %1664 = vmatpush3.bf16.msra.mxu1 %v2198_v9 }
 0x145   : > { %1665 = vmatprep.subr.bf16.mxu1 %v2001_v30 }
 0x148   : > { %1666 = vmatpush3.bf16.msra.mxu1 %v2207_v10 }
 0x1eb   : > { %v1645_v38 = vpop.f32.mrf.mxu1 }
 0x1ec   : > { %v552_v40 = vmul.f32 %v1645_v38, %v2273_v36 }
 0x1ed   : > { %v511_v39 = vpop.f32.mrf.mxu1 }
 0x1ee   : > { %v546_v41 = vmul.f32 %v2275_v37, %v511_v39 }
 0x1ef   : > { %v1646_v43 = vpop.f32.mrf.mxu1 }
 0x1f0   : > { %v554_v44 = vadd.f32 %v552_v40, %v546_v41  ;;  %v553_v54 = vmul.f32 %v1646_v43, %v2273_v36 }
 0x1f1   : > { %v514_v46 = vpop.f32.mrf.mxu1 }
 0x1f2   : > { %v547_v51 = vmul.f32 %v2275_v37, %v514_v46 }
 0x1f3   : > { %v1649_v48 = vpop.f32.mrf.mxu1 }
 0x1f4   : > { %v568_v55 = vmul.f32 %v1649_v48, %v2281_v49  ;;  %v555_v59 = vadd.f32 %v553_v54, %v547_v51 }
 0x1f5   : > { %v527_v50 = vpop.f32.mrf.mxu1 }
 0x1f6   : > { %v560_v52 = vmul.f32 %v2279_v47, %v527_v50 }
 0x1f7   : > { %v1650_v53 = vpop.f32.mrf.mxu1 }
 0x1f8   : > { %v562_v56 = vadd.f32 %v560_v52, %v554_v44  ;;  %v569_v63 = vmul.f32 %v1650_v53, %v2281_v49 }
 0x1f9   : > { %v530_v58 = vpop.f32.mrf.mxu1 }
 0x1fa   : > { %v570_v60 = vadd.f32 %v568_v55, %v562_v56  ;;  %v561_v61 = vmul.f32 %v2279_v47, %v530_v58  ;;  %v1858_v55 = vld [vmem:[%s2587_s2 + $0x28] sm:$0xff]  }
 0x1fc   : > { %v572_v62 = vadd.f32 %v570_v60, %v424_v57  ;;  %v563_v6 = vadd.f32 %v561_v61, %v555_v59 }
 0x1fe   : > { %v1503_v13 = vmul.f32 -1.442695, %v572_v62  ;;  %v571_v16 = vadd.f32 %v569_v63, %v563_v6 }
 0x200   : > { %1871 = vpow2.f32 %v1503_v13  ;;  %v573_v17 = vadd.f32 %v571_v16, %v425_v12  ;;  %v426_v13 = vld [vmem:[%s2590_s5 + $0x18] sm:$0xff] }
 0x202   : > { %v1504_v20 = vmul.f32 -1.442695, %v573_v17 }
 0x204   : > { %1873 = vpow2.f32 %v1504_v20 }
 0x20d   : > { %v1872_v21 = vpop.eup %1871 }
 0x20e   : > { %v580_v22 = vadd.f32 1.0, %v1872_v21 }
 0x210   : > { %1875 = vrcp.f32 %v580_v22 }
 0x211   : > { %v1874_v24 = vpop.eup %1873 }
 0x212   : > { %v581_v25 = vadd.f32 1.0, %v1874_v24 }
 0x214   : > { %1877 = vrcp.f32 %v581_v25 }
 0x21d   : > { %v2300_v29 = vpop.eup %1875 }
 0x21e   : > { %v728_v31 = vmul.f32 %v2300_v29, %v590_v28  ;;  %v729_v20 = vsub.f32 1.0, %v2300_v29 }
 0x221   : > { %v1878_v32 = vpop.eup %1877 }
 0x222   : > { %v592_v33 = vmul.f32 %v1878_v32, %v590_v28  ;;  %v789_v28 = vrot.slane %v2210_v11, 4 }
 0x224   : > { %v593_v34 = vpack.c.bf16 %v592_v33, %v592_v33  ;;  %v635_v45 = vrot.slane %v592_v33, 4 }
 0x226   : > { %1668 = vmatmul.mubr.bf16.vlgmr.msra.gmra.mxu1 %v593_v34  ;;  %v637_v52 = vsel %vm417_vm1, %v2175_v4, %v635_v45 }
 0x227   : > { %1703 = vmatprep.mubr.msk.bf16.mxu1 %vm818_vm3, %v1859_v26 }
 0x2e6   : > { %v628_v38 = vpop.f32.mrf.mxu1 }
 0x2e7   : > { %v639_v39 = vrot.slane %v628_v38, 4 }
 0x2e8   : > { %v1669_v40 = vpop.f32.mrf.mxu1 }
 0x2e9   : > { %v641_v41 = vsel %vm417_vm1, %v2222_v15, %v639_v39  ;;  %v644_v42 = vrot.slane %v639_v39, 4  ;;  %v1860_v39 = vld [vmem:[%s2588_s3 + $0x8] sm:$0xff]  }
 0x2ea   : > { %v643_v43 = vrot.slane %v641_v41, 4  ;;  %v631_v44 = vpop.f32.mrf.mxu1 }
 0x2ec   : > { %v645_v46 = vsel %vm417_vm1, %v643_v43, %v644_v42  ;;  %v1670_v48 = vpop.f32.mrf.mxu1  ;;  %v648_v50 = vsel %vm417_vm1, %v635_v45, %v643_v43 }
 0x2ed   : > { %v650_v51 = vpack.c.bf16 %v645_v46, %v645_v46  ;;  %v649_v54 = vpack.c.bf16 %v648_v50, %v637_v52 }
 0x2ef   : > { %1786 = vmatprep.subr.msk.bf16.mxu0 %vm417_vm1, %v650_v51  ;;  %v668_v53 = vsel %vm417_vm1, %v650_v51, 0 }
 0x2f0   : > { %1672 = vmatpush3.bf16.msra.mxu0 %v668_v53 }
 0x2f1   : > { %1673 = vmatprep.subr.bf16.mxu0 %v649_v54 }
 0x2f4   : > { %1674 = vmatpush3.bf16.msra.mxu0 %v649_v54 }
 0x2f5   : > { %1679 = vmatprep.subr.bf16.mxu0 %v2001_v30 }
 0x2f7   : > { %1676 = vmatmul.mubr.msk.bf16.vlgmr.msra.gmra.mxu0 %vm461_vm0, %v1858_v55 }
 0x2f8   : > { %1680 = vmatpush3.bf16.msra.mxu0 %v2153_v0  ;;  %1695 = vmatprep.mubr.msk.bf16.mxu0 %vm2002_vm2, %v2001_v30 }
 0x2f9   : > { %1681 = vmatprep.subr.bf16.mxu0 %v2001_v30 }
 0x2fc   : > { %1682 = vmatpush3.bf16.msra.mxu0 %v2158_v1 }
 0x2fd   : > { %1683 = vmatprep.subr.bf16.mxu0 %v2001_v30 }
 0x300   : > { %1684 = vmatpush3.bf16.msra.mxu0 %v2166_v2 }
 0x301   : > { %1685 = vmatprep.subr.bf16.mxu0 %v2001_v30 }
 0x304   : > { %1686 = vmatpush3.bf16.msra.mxu0 %v2173_v3 }
 0x305   : > { %1687 = vmatprep.subr.bf16.mxu0 %v2001_v30 }
 0x308   : > { %1688 = vmatpush3.bf16.msra.mxu0 %v2184_v7 }
 0x309   : > { %1689 = vmatprep.subr.bf16.mxu0 %v2001_v30 }
 0x30c   : > { %1690 = vmatpush3.bf16.msra.mxu0 %v2191_v8 }
 0x30d   : > { %1691 = vmatprep.subr.bf16.mxu0 %v2001_v30 }
 0x310   : > { %1692 = vmatpush3.bf16.msra.mxu0 %v2198_v9 }
 0x311   : > { %1693 = vmatprep.subr.bf16.mxu0 %v2001_v30 }
 0x314   : > { %1694 = vmatpush3.bf16.msra.mxu0 %v2207_v10 }
 0x3b7   : > { %v1677_v56 = vpop.f32.mrf.mxu0 }
 0x3b8   : > { %v722_v62 = vmul.f32 %v1677_v56, %v2279_v47 }
 0x3b9   : > { %v704_v57 = vpop.f32.mrf.mxu0 }
 0x3ba   : > { %v719_v60 = vmul.f32 %v704_v57, %v2275_v37 }
 0x3bb   : > { %v1678_v58 = vpop.f32.mrf.mxu0 }
 0x3bc   : > { %v724_v6 = vmul.f32 %v1678_v58, %v2281_v49 }
 0x3bd   : > { %v707_v59 = vpop.f32.mrf.mxu0 }
 0x3be   : > { %v720_v61 = vmul.f32 %v707_v59, %v2273_v36 }
 0x3c0   : > { %v721_v63 = vadd.f32 %v720_v61, %v719_v60 }
 0x3c2   : > { %v723_v12 = vadd.f32 %v722_v62, %v721_v63  ;;  %v774_v63 = vld [vmem:[%s2590_s5 + $0x28] sm:$0xff] }
 0x3c4   : > { %v725_v16 = vadd.f32 %v724_v6, %v723_v12 }
 0x3c6   : > { %v726_v17 = vadd.f32 %v725_v16, %v426_v13 }
 0x3c8   : > { %1879 = vtanh.f32 %v726_v17 }
 0x3d5   : > { %v1880_v21 = vpop.eup %1879 }
 0x3d6   : > { %v730_v22 = vmul.f32 %v1880_v21, %v729_v20 }
 0x3d8   : > { %v2345_v24 = vadd.f32 %v730_v22, %v728_v31  ;;  %v2365_v31 = vsel %vm417_vm1, %v589_v27, %v789_v28  ;;  %v1861_v27 = vld [vmem:[%s2588_s3 + $0x10] sm:$0xff]  }
 0x3da   : > { %v732_v25 = vpack.c.bf16 %v2345_v24, %v2345_v24  ;;  %1393 = vst [vmem:[%s2351_s20] sm:$0xff] %v2345_v24  ;;  %v796_v34 = vpack.c.bf16 %v2365_v31, %v2345_v24 }
 0x3dc   : > { %1696 = vmatmul.mubr.bf16.vlgmr.msra.gmra.mxu0 %v732_v25 }
 0x49c   : > { %v2360_v29 = vpop.f32.mrf.mxu0 }
 0x49d   : > { %v797_v32 = vpack.c.bf16 %v2235_v23, %v2360_v29  ;;  %v1862_v23 = vld [vmem:[%s2588_s3 + $0x18] sm:$0xff]  }
 0x49e   : > { %v1697_v33 = vpop.f32.mrf.mxu0 }
 0x49f   : > { %1699 = vmatprep.subr.bf16.mxu1 %v797_v32  ;;  %v1868_v33 = vld [vmem:[%s2589_s4 + $0x18] sm:$0xff]  }
 0x4a0   : > { %v770_v35 = vpop.f32.mrf.mxu0  ;;  %1700 = vmatpush3.bf16.msra.mxu1 %v797_v32 }
 0x4a1   : > { %1701 = vmatprep.subr.bf16.mxu1 %v796_v34 }
 0x4a2   : > { %v1698_v38 = vpop.f32.mrf.mxu0 }
 0x4a4   : > { %1702 = vmatpush3.bf16.msra.mxu1 %v796_v34  ;;  %v773_v34 = vld [vmem:[%s2590_s5 + $0x20] sm:$0xff] }
 0x4a5   : > { %1711 = vmatprep.subr.bf16.mxu1 %v2001_v30 }
 0x4a7   : > { %1704 = vmatmul.mubr.msk.bf16.vlgmr.msra.gmra.mxu1 %vm818_vm3, %v1860_v39 }
 0x4a8   : > { %1707 = vmatprep.mubr.msk.bf16.mxu1 %vm818_vm3, %v1861_v27  ;;  %1712 = vmatpush3.bf16.msra.mxu1 %v2153_v0 }
 0x4a9   : > { %1713 = vmatprep.subr.bf16.mxu1 %v2001_v30 }
 0x4ac   : > { %1714 = vmatpush3.bf16.msra.mxu1 %v2158_v1 }
 0x4ad   : > { %1715 = vmatprep.subr.bf16.mxu1 %v2001_v30 }
 0x4af   : > { %1708 = vmatmul.mubr.msk.bf16.gmra.mxu1 %vm818_vm3, %v1862_v23 }
 0x4b0   : > { %1716 = vmatpush3.bf16.msra.mxu1 %v2166_v2  ;;  %1727 = vmatprep.mubr.msk.bf16.mxu1 %vm2002_vm2, %v2001_v30 }
 0x4b1   : > { %1717 = vmatprep.subr.bf16.mxu1 %v2001_v30 }
 0x4b4   : > { %1718 = vmatpush3.bf16.msra.mxu1 %v2173_v3 }
 0x4b5   : > { %1719 = vmatprep.subr.bf16.mxu1 %v2001_v30 }
 0x4b8   : > { %1720 = vmatpush3.bf16.msra.mxu1 %v2184_v7 }
 0x4b9   : > { %1721 = vmatprep.subr.bf16.mxu1 %v2001_v30 }
 0x4bc   : > { %1722 = vmatpush3.bf16.msra.mxu1 %v2191_v8 }
 0x4bd   : > { %1723 = vmatprep.subr.bf16.mxu1 %v2001_v30 }
 0x4c0   : > { %1724 = vmatpush3.bf16.msra.mxu1 %v2198_v9 }
 0x4c1   : > { %1725 = vmatprep.subr.bf16.mxu1 %v2001_v30 }
 0x4c4   : > { %1726 = vmatpush3.bf16.msra.mxu1 %v2207_v10 }
 0x4c5   : > { %1751 = vmatprep.subr.bf16.mxu1 %v2001_v30 }
 0x567   : > { %v1705_v40 = vpop.f32.mrf.mxu1 }
 0x568   : > { %v898_v42 = vmul.f32 %v1705_v40, %v2273_v36 }
 0x569   : > { %v865_v41 = vpop.f32.mrf.mxu1 }
 0x56a   : > { %v896_v43 = vmul.f32 %v865_v41, %v2275_v37 }
 0x56b   : > { %v1706_v44 = vpop.f32.mrf.mxu1 }
 0x56c   : > { %v900_v45 = vadd.f32 %v898_v42, %v896_v43  ;;  %v899_v54 = vmul.f32 %v1706_v44, %v2273_v36 }
 0x56d   : > { %v868_v46 = vpop.f32.mrf.mxu1 }
 0x56e   : > { %v897_v51 = vmul.f32 %v868_v46, %v2275_v37 }
 0x56f   : > { %v1709_v48 = vpop.f32.mrf.mxu1 }
 0x570   : > { %v906_v55 = vmul.f32 %v1709_v48, %v2281_v49  ;;  %v901_v58 = vadd.f32 %v899_v54, %v897_v51 }
 0x571   : > { %v881_v50 = vpop.f32.mrf.mxu1 }
 0x572   : > { %v902_v52 = vmul.f32 %v881_v50, %v2279_v47 }
 0x573   : > { %v1710_v53 = vpop.f32.mrf.mxu1 }
 0x574   : > { %v904_v56 = vadd.f32 %v902_v52, %v900_v45  ;;  %v907_v61 = vmul.f32 %v1710_v53, %v2281_v49 }
 0x575   : > { %v884_v57 = vpop.f32.mrf.mxu1 }
 0x576   : > { %v2408_v59 = vadd.f32 %v906_v55, %v904_v56  ;;  %v903_v60 = vmul.f32 %v884_v57, %v2279_v47  ;;  %v775_v55 = vld [vmem:[%s2590_s5 + $0x30] sm:$0xff] }
 0x578   : > { %v905_v62 = vadd.f32 %v903_v60, %v901_v58  ;;  %v910_v35 = vadd.f32 %v2408_v59, %v773_v34 }
 0x57a   : > { %v909_v6 = vadd.f32 %v907_v61, %v905_v62  ;;  %v1517_v38 = vmul.f32 -1.442695, %v910_v35 }
 0x57c   : > { %v911_v12 = vadd.f32 %v909_v6, %v774_v63 }
 0x57e   : > { %v1518_v13 = vmul.f32 -1.442695, %v911_v12 }
 0x580   : > { %1881 = vpow2.f32 %v1518_v13 }
 0x58d   : > { %v1882_v16 = vpop.eup %1881 }
 0x58e   : > { %v919_v17 = vadd.f32 1.0, %v1882_v16 }
 0x590   : > { %1883 = vrcp.f32 %v919_v17 }
 0x591   : > { %1885 = vpow2.f32 %v1517_v38 }
 0x59d   : > { %v1884_v20 = vpop.eup %1883 }
 0x59e   : > { %v924_v21 = vmul.f32 %v1884_v20, %v2365_v31  ;;  %v1886_v40 = vpop.eup %1885 }
 0x59f   : > { %v918_v45 = vadd.f32 1.0, %v1886_v40 }
 0x5a0   : > { %v925_v22 = vpack.c.bf16 %v924_v21, %v924_v21 }
 0x5a1   : > { %1887 = vrcp.f32 %v918_v45 }
 0x5a2   : > { %1728 = vmatmul.mubr.bf16.vlgmr.msra.gmra.mxu1 %v925_v22 }
 0x5a3   : > { %1752 = vmatpush3.bf16.msra.mxu1 %v2153_v0  ;;  %1767 = vmatprep.mubr.msk.bf16.mxu1 %vm2002_vm2, %v2001_v30  ;;  %v1863_v0 = vld [vmem:[%s2588_s3 + $0x20] sm:$0xff]  }
 0x5a4   : > { %1753 = vmatprep.subr.bf16.mxu1 %v2001_v30  ;;  %1735 = vmatprep.mubr.msk.bf16.mxu0 %vm818_vm3, %v1863_v0 }
 0x5a7   : > { %1754 = vmatpush3.bf16.msra.mxu1 %v2158_v1  ;;  %v1062_v1 = vsel %vm417_vm1, %v2222_v15, %v2225_v18  ;;  %v1864_v18 = vld [vmem:[%s2588_s3 + $0x28] sm:$0xff]  }
 0x5a8   : > { %1755 = vmatprep.subr.bf16.mxu1 %v2001_v30 }
 0x5ab   : > { %1756 = vmatpush3.bf16.msra.mxu1 %v2166_v2  ;;  %v1064_v2 = vrot.slane %v1062_v1, 4 }
 0x5ac   : > { %1757 = vmatprep.subr.bf16.mxu1 %v2001_v30 }
 0x5af   : > { %1758 = vmatpush3.bf16.msra.mxu1 %v2173_v3 }
 0x5b0   : > { %1759 = vmatprep.subr.bf16.mxu1 %v2001_v30 }
 0x5b3   : > { %1760 = vmatpush3.bf16.msra.mxu1 %v2184_v7 }
 0x5b4   : > { %1761 = vmatprep.subr.bf16.mxu1 %v2001_v30 }
 0x5b7   : > { %1762 = vmatpush3.bf16.msra.mxu1 %v2191_v8 }
 0x5b8   : > { %1763 = vmatprep.subr.bf16.mxu1 %v2001_v30 }
 0x5bb   : > { %1764 = vmatpush3.bf16.msra.mxu1 %v2198_v9  ;;  %v966_v9 = vpack.c.bf16 %v924_v21, %v2345_v24  ;;  %v1068_v24 = vsel %vm417_vm1, %v2210_v11, %v1064_v2  ;;  %v1867_v11 = vld [vmem:[%s2589_s4 + $0x10] sm:$0xff]  }
 0x5bc   : > { %1765 = vmatprep.subr.bf16.mxu1 %v2001_v30 }
 0x5bf   : > { %1766 = vmatpush3.bf16.msra.mxu1 %v2207_v10  ;;  %v1065_v10 = vsel %vm417_vm1, %v1064_v2, %v793_v19 }
 0x5c0   : > { %v1070_v28 = vpack.c.bf16 %v1065_v10, %v1065_v10 }
 0x5c2   : > { %v1104_v19 = vsel %vm417_vm1, %v1070_v28, 0 }
 0x662   : > { %v960_v3 = vpop.f32.mrf.mxu1 }
 0x663   : > { %v967_v7 = vpack.c.bf16 %v960_v3, %v2360_v29  ;;  %v1061_v29 = vsel %vm417_vm1, %v2175_v4, %v2177_v5  ;;  %v1866_v5 = vld [vmem:[%s2589_s4 + $0x8] sm:$0xff]   ;;  %v1888_v3 = vpop.eup %1887 }
 0x664   : > { %v1729_v8 = vpop.f32.mrf.mxu1  ;;  %v1069_v32 = vpack.c.bf16 %v1068_v24, %v1061_v29  ;;  %v1043_v10 = vsub.f32 1.0, %v1888_v3 }
 0x665   : > { %1731 = vmatprep.subr.bf16.mxu0 %v967_v7 }
 0x666   : > { %v963_v25 = vpop.f32.mrf.mxu1  ;;  %1732 = vmatpush3.bf16.msra.mxu0 %v967_v7  ;;  %v1047_v7 = vld [vmem:[%s2590_s5 + $0x40] sm:$0xff] }
 0x667   : > { %1733 = vmatprep.subr.bf16.mxu0 %v966_v9 }
 0x668   : > { %v1730_v26 = vpop.f32.mrf.mxu1 }
 0x66a   : > { %1734 = vmatpush3.bf16.msra.mxu0 %v966_v9 }
 0x66b   : > { %1787 = vmatprep.subr.msk.bf16.mxu0 %vm417_vm1, %v1070_v28  ;;  %v1042_v28 = vmul.f32 %v1888_v3, %v2365_v31 }
 0x66d   : > { %1736 = vmatmul.mubr.msk.bf16.vlgmr.msra.gmra.mxu0 %vm818_vm3, %v1864_v18 }
 0x66e   : > { %1740 = vmatpush3.bf16.msra.mxu0 %v1104_v19  ;;  %1743 = vmatprep.mubr.msk.bf16.mxu0 %vm461_vm0, %v1865_v14 }
 0x66f   : > { %1741 = vmatprep.subr.bf16.mxu0 %v1069_v32 }
 0x672   : > { %1742 = vmatpush3.bf16.msra.mxu0 %v1069_v32 }
 0x675   : > { %1744 = vmatmul.mubr.msk.bf16.vlgmr.msra.gmra.mxu0 %vm461_vm0, %v1866_v5 }
 0x676   : > { %1747 = vmatprep.mubr.msk.bf16.mxu0 %vm461_vm0, %v1867_v11  ;;  %v1869_v11 = vld [vmem:[%s2589_s4 + $0x20] sm:$0xff]  }
 0x67d   : > { %1748 = vmatmul.mubr.msk.bf16.gmra.mxu0 %vm461_vm0, %v1868_v33 }
 0x67e   : > { %1775 = vmatprep.mubr.msk.bf16.mxu0 %vm461_vm0, %v1869_v11 }
 0x72d   : > { %v1737_v39 = vpop.f32.mrf.mxu0 }
 0x72e   : > { %v1036_v46 = vmul.f32 %v1737_v39, %v2279_v47 }
 0x72f   : > { %v1018_v27 = vpop.f32.mrf.mxu0 }
 0x730   : > { %v1033_v42 = vmul.f32 %v1018_v27, %v2275_v37 }
 0x731   : > { %v1738_v23 = vpop.f32.mrf.mxu0 }
 0x732   : > { %v1038_v51 = vmul.f32 %v1738_v23, %v2281_v49 }
 0x733   : > { %v1021_v41 = vpop.f32.mrf.mxu0 }
 0x734   : > { %v1034_v43 = vmul.f32 %v1021_v41, %v2273_v36 }
 0x735   : > { %v1745_v44 = vpop.f32.mrf.mxu0 }
 0x736   : > { %v1035_v48 = vadd.f32 %v1034_v43, %v1033_v42  ;;  %v1173_v53 = vmul.f32 %v1745_v44, %v2273_v36 }
 0x737   : > { %v1140_v50 = vpop.f32.mrf.mxu0 }
 0x738   : > { %v1037_v52 = vadd.f32 %v1036_v46, %v1035_v48  ;;  %v1171_v54 = vmul.f32 %v1140_v50, %v2275_v37 }
 0x739   : > { %v1746_v56 = vpop.f32.mrf.mxu0 }
 0x73a   : > { %v1039_v57 = vadd.f32 %v1038_v51, %v1037_v52  ;;  %v1175_v58 = vadd.f32 %v1173_v53, %v1171_v54  ;;  %v1174_v13 = vmul.f32 %v1746_v56, %v2273_v36 }
 0x73b   : > { %v1143_v59 = vpop.f32.mrf.mxu0 }
 0x73c   : > { %v1040_v60 = vadd.f32 %v1039_v57, %v775_v55  ;;  %v1172_v63 = vmul.f32 %v1143_v59, %v2275_v37 }
 0x73d   : > { %v1749_v61 = vpop.f32.mrf.mxu0 }
 0x73e   : > { %1889 = vtanh.f32 %v1040_v60  ;;  %v1181_v16 = vmul.f32 %v1749_v61, %v2281_v49  ;;  %v1176_v21 = vadd.f32 %v1174_v13, %v1172_v63  ;;  %v1048_v63 = vld [vmem:[%s2590_s5 + $0x48] sm:$0xff] }
 0x73f   : > { %v1156_v62 = vpop.f32.mrf.mxu0 }
 0x740   : > { %v1177_v6 = vmul.f32 %v1156_v62, %v2279_v47 }
 0x741   : > { %v1750_v12 = vpop.f32.mrf.mxu0 }
 0x742   : > { %v1179_v17 = vadd.f32 %v1177_v6, %v1175_v58  ;;  %v1182_v1 = vmul.f32 %v1750_v12, %v2281_v49 }
 0x743   : > { %v1159_v20 = vpop.f32.mrf.mxu0 }
 0x744   : > { %v1183_v22 = vadd.f32 %v1181_v16, %v1179_v17  ;;  %v1178_v0 = vmul.f32 %v1159_v20, %v2279_v47 }
 0x746   : > { %v1180_v2 = vadd.f32 %v1178_v0, %v1176_v21 }
 0x748   : > { %v1184_v8 = vadd.f32 %v1182_v1, %v1180_v2  ;;  %v1342_v1 = vld [vmem:[%s2591_s6] sm:$0x3] }
 0x74a   : > { %v1186_v9 = vadd.f32 %v1184_v8, %v1047_v7 }
 0x74b   : > { %v1890_v25 = vpop.eup %1889 }
 0x74c   : > { %v1532_v26 = vmul.f32 -1.442695, %v1186_v9  ;;  %v1044_v18 = vmul.f32 %v1890_v25, %v1043_v10 }
 0x74e   : > { %1891 = vpow2.f32 %v1532_v26  ;;  %v1045_v29 = vadd.f32 %v1044_v18, %v1042_v28 }
 0x750   : > { %v1339_v20 = vmul.f32 0.7, %v1045_v29 }
 0x75b   : > { %v1892_v24 = vpop.eup %1891 }
 0x75c   : > { %v1194_v14 = vadd.f32 1.0, %v1892_v24 }
 0x75e   : > { %1893 = vrcp.f32 %v1194_v14 }
 0x76b   : > { %v1894_v19 = vpop.eup %1893 }
 0x76c   : > { %v1199_v32 = vmul.f32 %v1894_v19, %v2365_v31 }
 0x76e   : > { %v1200_v5 = vpack.c.bf16 %v1199_v32, %v1199_v32  ;;  %v1242_v40 = vrot.slane %v1199_v32, 4 }
 0x770   : > { %1768 = vmatmul.mubr.bf16.vlgmr.msra.gmra.mxu1 %v1200_v5  ;;  %v1244_v45 = vsel %vm417_vm1, %v2175_v4, %v1242_v40  ;;  %v1046_v4 = vld [vmem:[%s2590_s5 + $0x38] sm:$0xff] }
 0x771   : > { %v1185_v50 = vadd.f32 %v1183_v22, %v1046_v4 }
 0x773   : > { %v1531_v51 = vmul.f32 -1.442695, %v1185_v50 }
 0x775   : > { %1895 = vpow2.f32 %v1531_v51 }
 0x782   : > { %v1896_v55 = vpop.eup %1895 }
 0x783   : > { %v1193_v59 = vadd.f32 1.0, %v1896_v55 }
 0x785   : > { %1897 = vrcp.f32 %v1193_v59 }
 0x792   : > { %v1898_v13 = vpop.eup %1897 }
 0x830   : > { %v1235_v33 = vpop.f32.mrf.mxu1 }
 0x831   : > { %v1246_v34 = vrot.slane %v1235_v33, 4 }
 0x832   : > { %v1769_v35 = vpop.f32.mrf.mxu1 }
 0x833   : > { %v1248_v38 = vsel %vm417_vm1, %v2222_v15, %v1246_v34  ;;  %v1251_v39 = vrot.slane %v1246_v34, 4  ;;  %v1870_v15 = vld [vmem:[%s2589_s4 + $0x28] sm:$0xff]  }
 0x834   : > { %v1250_v27 = vrot.slane %v1248_v38, 4  ;;  %v1238_v23 = vpop.f32.mrf.mxu1 }
 0x836   : > { %v1252_v41 = vsel %vm417_vm1, %v1250_v27, %v1251_v39  ;;  %v1770_v42 = vpop.f32.mrf.mxu1  ;;  %v1255_v43 = vsel %vm417_vm1, %v1242_v40, %v1250_v27 }
 0x837   : > { %v1257_v44 = vpack.c.bf16 %v1252_v41, %v1252_v41  ;;  %v1256_v48 = vpack.c.bf16 %v1255_v43, %v1244_v45 }
 0x839   : > { %1788 = vmatprep.subr.msk.bf16.mxu0 %vm417_vm1, %v1257_v44  ;;  %v1275_v46 = vsel %vm417_vm1, %v1257_v44, 0 }
 0x83a   : > { %1772 = vmatpush3.bf16.msra.mxu0 %v1275_v46 }
 0x83b   : > { %1773 = vmatprep.subr.bf16.mxu0 %v1256_v48 }
 0x83e   : > { %1774 = vmatpush3.bf16.msra.mxu0 %v1256_v48 }
 0x83f   : > { %1779 = vmatprep.subr.bf16.mxu0 %v2001_v30 }
 0x841   : > { %1776 = vmatmul.mubr.msk.bf16.vlgmr.msra.gmra.mxu0 %vm461_vm0, %v1870_v15 }
 0x842   : > { %1781 = vmatprep.mubr.msk.bf16.mxu0 %vm2002_vm2, %v2001_v30 }
 0x901   : > { %v1777_v52 = vpop.f32.mrf.mxu0 }
 0x902   : > { %v1329_v60 = vmul.f32 %v1777_v52, %v2279_v47 }
 0x903   : > { %v1311_v53 = vpop.f32.mrf.mxu0 }
 0x904   : > { %v1326_v57 = vmul.f32 %v1311_v53, %v2275_v37  ;;  %v1336_v37 = vsub.f32 1.0, %v1898_v13 }
 0x905   : > { %v1778_v54 = vpop.f32.mrf.mxu0 }
 0x906   : > { %v1331_v61 = vmul.f32 %v1778_v54, %v2281_v49 }
 0x907   : > { %v1314_v56 = vpop.f32.mrf.mxu0 }
 0x908   : > { %v1327_v58 = vmul.f32 %v1314_v56, %v2273_v36  ;;  %v1335_v36 = vmul.f32 %v1898_v13, %v2365_v31  ;;  %v1344_v31 = vld [vmem:[%s2590_s5 + $0x50] sm:$0xf] }
 0x90a   : > { %v1328_v30 = vadd.f32 %v1327_v58, %v1326_v57 }
 0x90c   : > { %v1330_v62 = vadd.f32 %v1329_v60, %v1328_v30 }
 0x90e   : > { %v1332_v6 = vadd.f32 %v1331_v61, %v1330_v62 }
 0x910   : > { %v1333_v12 = vadd.f32 %v1332_v6, %v1048_v63 }
 0x912   : > { %1899 = vtanh.f32 %v1333_v12 }
 0x91f   : > { %v1900_v16 = vpop.eup %1899 }
 0x920   : > { %v1337_v17 = vmul.f32 %v1900_v16, %v1336_v37 }
 0x922   : > { %v1338_v47 = vadd.f32 %v1337_v17, %v1335_v36 }
 0x924   : > { %v1340_v21 = vmul.f32 0.3, %v1338_v47 }
 0x926   : > { %v1341_v49 = vadd.f32 %v1340_v21, %v1339_v20 }
 0x928   : > { %v1343_v22 = vpack.c.bf16 %v1341_v49, %v1341_v49  ;;  %1394 = vst [vmem:[%s2351_s20 + $0x8] sm:$0xff] %v1341_v49 }
 0x92a   : > { %v1350_v0 = vsel %vm417_vm1, %v1343_v22, 0 }
 0x92b   : > { %1780 = vmatpush3.bf16.msra.mxu0 %v1350_v0 }
 0x92e   : > { %1782 = vmatmul.mubr.msk.bf16.vlgmr.msra.gmra.mxu0 %vm1345_vm4, %v1342_v1 }
 0x9ee   : > { %v1386_v2 = vpop.f32.mrf.mxu0 }
 0x9ef   : > { %v1387_v3 = vadd.f32 %v1386_v2, %v1344_v31 }
 0x9f0   : > { %v1783_v7 = vpop.f32.mrf.mxu0 }
 0x9f1   : > { %1901 = vtanh.f32 %v1387_v3 }
 0x9f2   : > { %v1389_v8 = vpop.f32.mrf.mxu0 }
 0x9f4   : > { %v1784_v9 = vpop.f32.mrf.mxu0 }
 0x9fe   : > { %v1902_v10 = vpop.eup %1901 }
 0x9ff   : > { %1395 = vst [vmem:[%s2351_s20 + $0x10] sm:$0xf] %v1902_v10 }
 0xa00   : > { %1944 = shalt.err (!%p1941_p10)
}
 0xa01   : > { %s1945_s20 = scalar_lea.hbm %s2541_s9, 384  ;;  %s1949_s21 = scalar_lea.hbm %s2592_s7, 768 }
 0xa02   : > { %p1946_p1 = scmp.ne.s32.totalorder %s2541_s9, %s1945_s20  ;;  %p1950_p0 = scmp.lt.s32.totalorder %s2541_s9, %s2592_s7 }
 0xa03   : > { %p1951_p2 = scmp.lt.s32.totalorder %s1949_s21, %s1945_s20 }
 0xa04   : > { %p1947_p3 = pnand %p1946_p1, %p2601_p12 }
 0xa05   : > { %p1952_p6 = por %p1951_p2, %p1950_p0 }
 0xa06   : > { %p1948_p9 = pneg %p1947_p3 }
 0xa08   : > { %p1953_p11 = pnand %p1952_p6, %p1948_p9 }
 0xa0a   : > { %1956 = shalt.err (!%p1953_p11)
}
 0xa0b   : > { %s2004_s29 = smov 128   ;;  %s2005_s14 = smov 256  }
 0xa0c   : > { %s2006_s19 = smov 8  }
 0xa0d   : > { %1793 = dma.vmem_to_hbm [thread:$0]  (%p2601_p12), %s2536_s8, 384, %s2541_s9, %s1397_s15, %s2004_s29, %s2005_s14, %s2006_s19  }
 0xa0e PF: > { %s1424_s28 = sand.u32 1, %s1983_s24   ;;  %p2602_p13 = scmp.ne.s32.totalorder %s2597_s13, 0 }
 0xa0f   : > { %p2603_p4 = scmp.ge.s32.totalorder %s1995_s27, 2  ;;  %s1425_s22 = scalar_lea.sflag [#allocation4], %s1424_s28 }
 0xa11   : > { %p1800_p5 = pnand %p2603_p4, %p2602_p13 }
 0xa13   : > { %p1801_p7 = pneg %p1800_p5 }
 0xa15   : > { %1978 = dma.done.wait (%p1801_p7), %s1425_s22, 384  }
 0xa16   : > { %1980 = vsyncadd (%p1801_p7), %s1425_s22, 4294966912  ;;  %p20_p8 = scmp.ge.s32.totalorder %s2072_s30, 4   ;;  %s2604_s24 = smov %s1987_s25 }
 0xa17   : > { %s2605_s25 = smov %s1991_s26  ;;  %s2606_s26 = smov %s2084_s10 }
 0xa18   : > { %s2607_s27 = smov %s2072_s30  ;;  %22 = sbr.rel (!%p20_p8) target bundleno = 5 (0x5), region = 93 }
 0xa1d   :  { %1430 = vsyncpa [#allocation3], 1 }
 0xa1e   :  { %1432 = vsyncpa [#allocation3 + $0x1], 1 }
 0xa1f   :  { %1433 = vsyncpa [#allocation4], 1 }
 0xa20   :  { %1435 = vsyncpa [#allocation4 + $0x1], 1 }

</bundles_post_ra>
